<compile_context>
chip_gen: v5e
topology: v5e:2x2
jax: 0.10.0
libtpu: 0.0.40
codegen_flags: <defaults>
</compile_context>

<pallas_src>
import functools
import math

import jax
import jax.numpy as jnp
from jax.experimental import pallas as pl
from jax.experimental.pallas import tpu as pltpu


# ----------------------------- shared in-kernel helpers -----------------------------

def _layer_norm(x, gamma, beta, eps=1e-5):
    mu = jnp.mean(x, axis=-1, keepdims=True)
    var = jnp.mean((x - mu) ** 2, axis=-1, keepdims=True)
    x_hat = (x - mu) * jax.lax.rsqrt(var + eps)
    return x_hat * gamma + beta


def _qkv_project(x_f, pos, wqkv_ref, bqkv_ref):
    """Fused QKV projection (one matmul) + batch-independent positional matmul."""
    bf16, f32 = jnp.bfloat16, jnp.float32
    qkv = jnp.dot(x_f.astype(bf16), wqkv_ref[...],
                  preferred_element_type=f32) + bqkv_ref[...]          # (N, 3d)
    pos_qkv = jnp.dot(pos.astype(bf16), wqkv_ref[...],
                      preferred_element_type=f32)                      # (S, 3d)
    return qkv, pos_qkv


def _ffn_and_norms(x_f, attn, w1_ref, b1_ref, w2_ref, b2_ref,
                   g1_ref, be1_ref, g2_ref, be2_ref):
    """residual + LN1 + linear2(relu(linear1(.))) + residual + LN2 (all row-parallel)."""
    bf16, f32 = jnp.bfloat16, jnp.float32
    x1 = _layer_norm(x_f + attn, g1_ref[...], be1_ref[...])
    h1 = jnp.dot(x1.astype(bf16), w1_ref[...], preferred_element_type=f32) + b1_ref[...]
    h1 = jnp.maximum(h1, 0.0)
    ff = jnp.dot(h1.astype(bf16), w2_ref[...], preferred_element_type=f32) + b2_ref[...]
    return _layer_norm(x1 + ff, g2_ref[...], be2_ref[...])


# ------------------------- primary kernel: head-batched attention -------------------------

def encoder_layer_kernel_batched(src_ref, pos_ref,
                                 wqkv_ref, bqkv_ref, wo_ref, bo_ref,
                                 w1_ref, b1_ref, w2_ref, b2_ref,
                                 g1_ref, be1_ref, g2_ref, be2_ref,
                                 o_ref, *, nhead):
    S, B, d = src_ref.shape
    dh = d // nhead
    G = B * nhead
    N = S * B
    bf16, f32 = jnp.bfloat16, jnp.float32

    x_f = src_ref[...].astype(f32).reshape(N, d)          # (S*B, d), seq-major rows
    pos = pos_ref[...].astype(f32)                        # (S, d)

    # ---- fused QKV projection; pos term only touches the Q/K columns ----
    qkv, pos_qkv = _qkv_project(x_f, pos, wqkv_ref, bqkv_ref)
    qkv3 = qkv.reshape(S, B, 3 * d)
    qk3 = qkv3[..., :2 * d] + pos_qkv[:, None, :2 * d]    # (S, B, 2d)
    v3 = qkv3[..., 2 * d:]                                 # (S, B, d)

    def to_heads(t):                                       # (S, B, nhead*dh) -> (G, S, dh)
        t = t.reshape(S, G, dh)
        return pltpu.einshape("sgd->gsd", t).astype(bf16)

    qh = to_heads(qk3[..., :d])                            # Q scale pre-folded into weights
    kh = to_heads(qk3[..., d:])
    vh = to_heads(v3)

    # ---- single head-batched attention contraction pair ----
    s_att = jnp.einsum('gqd,gkd->gqk', qh, kh, preferred_element_type=f32)   # (G, S, S)
    s_att = s_att - jnp.max(s_att, axis=-1, keepdims=True)
    p = jnp.exp(s_att)
    p = p * pl.reciprocal(jnp.sum(p, axis=-1, keepdims=True), approx=True)
    ctx = jnp.einsum('gqk,gkd->gqd', p.astype(bf16), vh,
                     preferred_element_type=f32)                              # (G, S, dh)
    # contiguous re-assembly back to seq-major (N, d) rows for the single Wo matmul
    ctx = pltpu.einshape("gsd->sgd", ctx).reshape(N, d)

    attn = jnp.dot(ctx.astype(bf16), wo_ref[...],
                   preferred_element_type=f32) + bo_ref[...]

    out = _ffn_and_norms(x_f, attn, w1_ref, b1_ref, w2_ref, b2_ref,
                         g1_ref, be1_ref, g2_ref, be2_ref)
    o_ref[...] = out.reshape(S, B, d).astype(o_ref.dtype)


# ---------------- fallback kernel: batch-major + unrolled head loop (proven ops) ----------------

def encoder_layer_kernel_headloop(src_ref, pos_ref,
                                  wqkv_ref, bqkv_ref, wo_ref, bo_ref,
                                  w1_ref, b1_ref, w2_ref, b2_ref,
                                  g1_ref, be1_ref, g2_ref, be2_ref,
                                  o_ref, *, nhead):
    B, S, d = src_ref.shape
    dh = d // nhead
    N = B * S
    bf16, f32 = jnp.bfloat16, jnp.float32

    x_f = src_ref[...].astype(f32).reshape(N, d)           # batch-major rows
    pos = pos_ref[...].astype(f32)

    qkv, pos_qkv = _qkv_project(x_f, pos, wqkv_ref, bqkv_ref)
    qkv3 = qkv.reshape(B, S, 3 * d)
    qk3 = qkv3[..., :2 * d] + pos_qkv[None, :, :2 * d]
    v3 = qkv3[..., 2 * d:]

    wo = wo_ref[...]
    attn = jnp.zeros((N, d), f32)
    for h in range(nhead):
        sl = slice(h * dh, (h + 1) * dh)
        qh = qk3[..., sl].astype(bf16)
        kh = qk3[..., d + h * dh:d + (h + 1) * dh].astype(bf16)
        vh = v3[..., sl].astype(bf16)
        s_att = jnp.einsum('bqd,bkd->bqk', qh, kh, preferred_element_type=f32)
        s_att = s_att - jnp.max(s_att, axis=-1, keepdims=True)
        p = jnp.exp(s_att)
        p = p * pl.reciprocal(jnp.sum(p, axis=-1, keepdims=True), approx=True)
        ctx = jnp.einsum('bqk,bkd->bqd', p.astype(bf16), vh, preferred_element_type=f32)
        attn = attn + jnp.dot(ctx.reshape(N, dh).astype(bf16), wo[sl, :],
                              preferred_element_type=f32)
    attn = attn + bo_ref[...]

    out = _ffn_and_norms(x_f, attn, w1_ref, b1_ref, w2_ref, b2_ref,
                         g1_ref, be1_ref, g2_ref, be2_ref)
    o_ref[...] = out.reshape(B, S, d).astype(o_ref.dtype)


# ------------------------------------ wrapper / params ------------------------------------

def transformer_encoder_layer(src, pos, packed, *, nhead):
    """src: (S, B, d_model), pos: (S, d_model). Returns (S, B, d_model).

    `packed` must come from pack_params (weights already transposed / bf16 / Q-scaled),
    so this wrapper issues no extra XLA ops besides the pallas_call itself.
    """
    S, B, d = src.shape
    args = (src, pos, packed["wqkv"], packed["bqkv"], packed["wo"], packed["bo"],
            packed["w1"], packed["b1"], packed["w2"], packed["b2"],
            packed["g1"], packed["be1"], packed["g2"], packed["be2"])
    try:
        out = pl.pallas_call(
            functools.partial(encoder_layer_kernel_batched, nhead=nhead),
            out_shape=jax.ShapeDtypeStruct((S, B, d), src.dtype),
        )(*args)
        return jax.block_until_ready(out)
    except Exception:
        # Compatibility fallback for Mosaic builds that cannot lower the in-kernel
        # head relayout: batch-major layout (two tiny wrapper transposes) + head loop.
        src_bsd = jnp.transpose(src, (1, 0, 2))
        out = pl.pallas_call(
            functools.partial(encoder_layer_kernel_headloop, nhead=nhead),
            out_shape=jax.ShapeDtypeStruct((B, S, d), src.dtype),
        )(src_bsd, *args[1:])
        return jnp.transpose(jax.block_until_ready(out), (1, 0, 2))


def pack_params(raw, d_model, nhead):
    """One-time parameter prep: transpose weights to matmul layout, cast to bf16,
    and fold the 1/sqrt(head_dim) Q scaling into the Q columns of W_qkv and b_qkv."""
    bf16, f32 = jnp.bfloat16, jnp.float32
    dh = d_model // nhead
    q_scale = 1.0 / math.sqrt(dh)
    col_scale = jnp.concatenate([jnp.full((d_model,), q_scale, f32),
                                 jnp.ones((2 * d_model,), f32)])
    wqkv = raw["in_w"].T * col_scale[None, :]                    # (d, 3d), Q cols pre-scaled
    bqkv = raw["in_b"].reshape(1, 3 * d_model) * col_scale[None, :]
    return {
        "wqkv": wqkv.astype(bf16),
        "bqkv": bqkv.astype(f32),
        "wo": raw["out_w"].T.astype(bf16),
        "bo": raw["out_b"].reshape(1, d_model).astype(f32),
        "w1": raw["w1"].T.astype(bf16),
        "b1": raw["b1"].reshape(1, -1).astype(f32),
        "w2": raw["w2"].T.astype(bf16),
        "b2": raw["b2"].reshape(1, d_model).astype(f32),
        "g1": raw["g1"].reshape(1, d_model).astype(f32),
        "be1": raw["be1"].reshape(1, d_model).astype(f32),
        "g2": raw["g2"].reshape(1, d_model).astype(f32),
        "be2": raw["be2"].reshape(1, d_model).astype(f32),
    }


def init_params(key, d_model, nhead, dim_feedforward):
    """Raw params in PyTorch layout (in_proj_weight (3d,d), linear.weight (out,in), ...)."""
    ks = jax.random.split(key, 6)
    scale = 0.02
    return {
        "in_w": scale * jax.random.normal(ks[0], (3 * d_model, d_model), jnp.float32),
        "in_b": scale * jax.random.normal(ks[1], (3 * d_model,), jnp.float32),
        "out_w": scale * jax.random.normal(ks[2], (d_model, d_model), jnp.float32),
        "out_b": jnp.zeros((d_model,), jnp.float32),
        "w1": scale * jax.random.normal(ks[3], (dim_feedforward, d_model), jnp.float32),
        "b1": jnp.zeros((dim_feedforward,), jnp.float32),
        "w2": scale * jax.random.normal(ks[4], (d_model, dim_feedforward), jnp.float32),
        "b2": jnp.zeros((d_model,), jnp.float32),
        "g1": jnp.ones((d_model,), jnp.float32),
        "be1": jnp.zeros((d_model,), jnp.float32),
        "g2": jnp.ones((d_model,), jnp.float32),
        "be2": jnp.zeros((d_model,), jnp.float32),
    }


if __name__ == "__main__":
    S, B, d_model = 8, 2, 32
    nhead, dim_feedforward = 4, 64

    key = jax.random.PRNGKey(0)
    k_src, k_pos, k_par = jax.random.split(key, 3)

    src = jax.random.normal(k_src, (S, B, d_model), jnp.float32)
    pos = jax.random.normal(k_pos, (S, d_model), jnp.float32)
    raw = init_params(k_par, d_model, nhead, dim_feedforward)
    packed = pack_params(raw, d_model, nhead)     # one-time weight prep (hoisted out of the call)

    out = transformer_encoder_layer(src, pos, packed, nhead=nhead)
    out = jax.block_until_ready(out)

    assert out.shape == (S, B, d_model)
    assert bool(jnp.all(jnp.isfinite(out)))
    print("KERNEL_OK")
</pallas_src>

<mosaic_0001>
module attributes {stable_mosaic.version = 11 : i64} {
  func.func @encoder_layer_kernel_batched(%arg0: memref<8x2x32xf32, #tpu.memory_space<vmem>>, %arg1: memref<8x32xf32, #tpu.memory_space<vmem>>, %arg2: memref<32x96xbf16, #tpu.memory_space<vmem>>, %arg3: memref<1x96xf32, #tpu.memory_space<vmem>>, %arg4: memref<32x32xbf16, #tpu.memory_space<vmem>>, %arg5: memref<1x32xf32, #tpu.memory_space<vmem>>, %arg6: memref<32x64xbf16, #tpu.memory_space<vmem>>, %arg7: memref<1x64xf32, #tpu.memory_space<vmem>>, %arg8: memref<64x32xbf16, #tpu.memory_space<vmem>>, %arg9: memref<1x32xf32, #tpu.memory_space<vmem>>, %arg10: memref<1x32xf32, #tpu.memory_space<vmem>>, %arg11: memref<1x32xf32, #tpu.memory_space<vmem>>, %arg12: memref<1x32xf32, #tpu.memory_space<vmem>>, %arg13: memref<1x32xf32, #tpu.memory_space<vmem>>, %arg14: memref<8x2x32xf32, #tpu.memory_space<vmem>>) attributes {dimension_semantics = [], scalar_prefetch = 0 : i64, scratch_operands = 0 : i64, tpu.core_type = #tpu.core_type<tc>} {
    %c0 = arith.constant 0 : index
    %c0_0 = arith.constant 0 : index
    %c0_1 = arith.constant 0 : index
    %0 = vector.load %arg0[%c0, %c0_0, %c0_1] : memref<8x2x32xf32, #tpu.memory_space<vmem>>, vector<8x2x32xf32>
    %1 = vector.shape_cast %0 : vector<8x2x32xf32> to vector<16x32xf32>
    %c0_2 = arith.constant 0 : index
    %c0_3 = arith.constant 0 : index
    %2 = vector.load %arg1[%c0_2, %c0_3] : memref<8x32xf32, #tpu.memory_space<vmem>>, vector<8x32xf32>
    %3 = arith.truncf %1 : vector<16x32xf32> to vector<16x32xbf16>
    %c0_4 = arith.constant 0 : index
    %c0_5 = arith.constant 0 : index
    %4 = vector.load %arg2[%c0_4, %c0_5] : memref<32x96xbf16, #tpu.memory_space<vmem>>, vector<32x96xbf16>
    %cst = arith.constant dense<0.000000e+00> : vector<16x96xf32>
    %5 = tpu.matmul %3, %4, %cst {dimension_numbers = #tpu.dot_dimension_numbers<[1], [0], [0], [1], [0, 0, 1, 1], [], []>} : vector<16x32xbf16>, vector<32x96xbf16>, vector<16x96xf32> -> vector<16x96xf32>
    %c0_6 = arith.constant 0 : index
    %c0_7 = arith.constant 0 : index
    %6 = vector.load %arg3[%c0_6, %c0_7] : memref<1x96xf32, #tpu.memory_space<vmem>>, vector<1x96xf32>
    %7 = vector.broadcast %6 : vector<1x96xf32> to vector<16x96xf32>
    %8 = arith.addf %5, %7 : vector<16x96xf32>
    %9 = arith.truncf %2 : vector<8x32xf32> to vector<8x32xbf16>
    %c0_8 = arith.constant 0 : index
    %c0_9 = arith.constant 0 : index
    %10 = vector.load %arg2[%c0_8, %c0_9] : memref<32x96xbf16, #tpu.memory_space<vmem>>, vector<32x96xbf16>
    %cst_10 = arith.constant dense<0.000000e+00> : vector<8x96xf32>
    %11 = tpu.matmul %9, %10, %cst_10 {dimension_numbers = #tpu.dot_dimension_numbers<[1], [0], [0], [1], [0, 0, 1, 1], [], []>} : vector<8x32xbf16>, vector<32x96xbf16>, vector<8x96xf32> -> vector<8x96xf32>
    %12 = vector.shape_cast %8 : vector<16x96xf32> to vector<8x2x96xf32>
    %13 = vector.extract_strided_slice %12 {offsets = [0, 0, 0], sizes = [8, 2, 64], strides = [1, 1, 1]} : vector<8x2x96xf32> to vector<8x2x64xf32>
    %14 = vector.extract_strided_slice %11 {offsets = [0, 0], sizes = [8, 64], strides = [1, 1]} : vector<8x96xf32> to vector<8x64xf32>
    %15 = vector.shape_cast %14 : vector<8x64xf32> to vector<8x1x64xf32>
    %16 = vector.broadcast %15 : vector<8x1x64xf32> to vector<8x2x64xf32>
    %17 = arith.addf %13, %16 : vector<8x2x64xf32>
    %18 = vector.extract_strided_slice %12 {offsets = [0, 0, 64], sizes = [8, 2, 32], strides = [1, 1, 1]} : vector<8x2x96xf32> to vector<8x2x32xf32>
    %19 = vector.extract_strided_slice %17 {offsets = [0, 0, 0], sizes = [8, 2, 32], strides = [1, 1, 1]} : vector<8x2x64xf32> to vector<8x2x32xf32>
    %20 = vector.shape_cast %19 : vector<8x2x32xf32> to vector<8x8x8xf32>
    %21 = tpu.transpose %20, [1, 0, 2] : vector<8x8x8xf32> -> vector<8x8x8xf32>
    %22 = arith.truncf %21 : vector<8x8x8xf32> to vector<8x8x8xbf16>
    %23 = vector.extract_strided_slice %17 {offsets = [0, 0, 32], sizes = [8, 2, 32], strides = [1, 1, 1]} : vector<8x2x64xf32> to vector<8x2x32xf32>
    %24 = vector.shape_cast %23 : vector<8x2x32xf32> to vector<8x8x8xf32>
    %25 = tpu.transpose %24, [1, 0, 2] : vector<8x8x8xf32> -> vector<8x8x8xf32>
    %26 = arith.truncf %25 : vector<8x8x8xf32> to vector<8x8x8xbf16>
    %27 = vector.shape_cast %18 : vector<8x2x32xf32> to vector<8x8x8xf32>
    %28 = tpu.transpose %27, [1, 0, 2] : vector<8x8x8xf32> -> vector<8x8x8xf32>
    %29 = arith.truncf %28 : vector<8x8x8xf32> to vector<8x8x8xbf16>
    "tpu.trace_start"() <{level = 10 : i32, message = "gqd,gkd->gqk"}> : () -> ()
    %cst_11 = arith.constant dense<0.000000e+00> : vector<8x8x8xf32>
    %30 = tpu.matmul %22, %26, %cst_11 {dimension_numbers = #tpu.dot_dimension_numbers<[2], [2], [1], [1], [0, 0, 0, 1, 1, 1], [0], [0]>} : vector<8x8x8xbf16>, vector<8x8x8xbf16>, vector<8x8x8xf32> -> vector<8x8x8xf32>
    "tpu.trace_stop"() : () -> ()
    %cst_12 = arith.constant dense<0xFF800000> : vector<8x8xf32>
    %31 = vector.multi_reduction <maximumf>, %30, %cst_12 [2] : vector<8x8x8xf32> to vector<8x8xf32>
    %32 = vector.shape_cast %31 : vector<8x8xf32> to vector<8x8x1xf32>
    %33 = vector.broadcast %32 : vector<8x8x1xf32> to vector<8x8x8xf32>
    %34 = arith.subf %30, %33 : vector<8x8x8xf32>
    %35 = math.exp %34 : vector<8x8x8xf32>
    %cst_13 = arith.constant dense<0.000000e+00> : vector<8x8xf32>
    %36 = vector.multi_reduction <add>, %35, %cst_13 [2] : vector<8x8x8xf32> to vector<8x8xf32>
    %37 = vector.shape_cast %36 : vector<8x8xf32> to vector<8x8x1xf32>
    %38 = tpu.reciprocal %37 {approx = true} : vector<8x8x1xf32> -> vector<8x8x1xf32>
    %39 = vector.broadcast %38 : vector<8x8x1xf32> to vector<8x8x8xf32>
    %40 = arith.mulf %35, %39 : vector<8x8x8xf32>
    %41 = arith.truncf %40 : vector<8x8x8xf32> to vector<8x8x8xbf16>
    "tpu.trace_start"() <{level = 10 : i32, message = "gqk,gkd->gqd"}> : () -> ()
    %cst_14 = arith.constant dense<0.000000e+00> : vector<8x8x8xf32>
    %42 = tpu.matmul %41, %29, %cst_14 {dimension_numbers = #tpu.dot_dimension_numbers<[2], [1], [1], [2], [0, 0, 0, 1, 1, 2], [0], [0]>} : vector<8x8x8xbf16>, vector<8x8x8xbf16>, vector<8x8x8xf32> -> vector<8x8x8xf32>
    "tpu.trace_stop"() : () -> ()
    %43 = tpu.transpose %42, [1, 0, 2] : vector<8x8x8xf32> -> vector<8x8x8xf32>
    %44 = vector.shape_cast %43 : vector<8x8x8xf32> to vector<16x32xf32>
    %45 = arith.truncf %44 : vector<16x32xf32> to vector<16x32xbf16>
    %c0_15 = arith.constant 0 : index
    %c0_16 = arith.constant 0 : index
    %46 = vector.load %arg4[%c0_15, %c0_16] : memref<32x32xbf16, #tpu.memory_space<vmem>>, vector<32x32xbf16>
    %cst_17 = arith.constant dense<0.000000e+00> : vector<16x32xf32>
    %47 = tpu.matmul %45, %46, %cst_17 {dimension_numbers = #tpu.dot_dimension_numbers<[1], [0], [0], [1], [0, 0, 1, 1], [], []>} : vector<16x32xbf16>, vector<32x32xbf16>, vector<16x32xf32> -> vector<16x32xf32>
    %c0_18 = arith.constant 0 : index
    %c0_19 = arith.constant 0 : index
    %48 = vector.load %arg5[%c0_18, %c0_19] : memref<1x32xf32, #tpu.memory_space<vmem>>, vector<1x32xf32>
    %49 = vector.broadcast %48 : vector<1x32xf32> to vector<16x32xf32>
    %50 = arith.addf %47, %49 : vector<16x32xf32>
    %51 = arith.addf %1, %50 : vector<16x32xf32>
    %c0_20 = arith.constant 0 : index
    %c0_21 = arith.constant 0 : index
    %52 = vector.load %arg10[%c0_20, %c0_21] : memref<1x32xf32, #tpu.memory_space<vmem>>, vector<1x32xf32>
    %c0_22 = arith.constant 0 : index
    %c0_23 = arith.constant 0 : index
    %53 = vector.load %arg11[%c0_22, %c0_23] : memref<1x32xf32, #tpu.memory_space<vmem>>, vector<1x32xf32>
    %cst_24 = arith.constant dense<0.000000e+00> : vector<16xf32>
    %54 = vector.multi_reduction <add>, %51, %cst_24 [1] : vector<16x32xf32> to vector<16xf32>
    %55 = vector.shape_cast %54 : vector<16xf32> to vector<16x1xf32>
    %cst_25 = arith.constant 3.200000e+01 : f32
    %56 = vector.broadcast %cst_25 : f32 to vector<16x1xf32>
    %57 = arith.divf %55, %56 : vector<16x1xf32>
    %58 = vector.broadcast %57 : vector<16x1xf32> to vector<16x32xf32>
    %59 = arith.subf %51, %58 : vector<16x32xf32>
    %60 = arith.mulf %59, %59 : vector<16x32xf32>
    %cst_26 = arith.constant dense<0.000000e+00> : vector<16xf32>
    %61 = vector.multi_reduction <add>, %60, %cst_26 [1] : vector<16x32xf32> to vector<16xf32>
    %62 = vector.shape_cast %61 : vector<16xf32> to vector<16x1xf32>
    %cst_27 = arith.constant 3.200000e+01 : f32
    %63 = vector.broadcast %cst_27 : f32 to vector<16x1xf32>
    %64 = arith.divf %62, %63 : vector<16x1xf32>
    %65 = vector.broadcast %57 : vector<16x1xf32> to vector<16x32xf32>
    %66 = arith.subf %51, %65 : vector<16x32xf32>
    %cst_28 = arith.constant 9.99999974E-6 : f32
    %67 = vector.broadcast %cst_28 : f32 to vector<16x1xf32>
    %68 = arith.addf %64, %67 : vector<16x1xf32>
    %69 = math.rsqrt %68 : vector<16x1xf32>
    %70 = vector.broadcast %69 : vector<16x1xf32> to vector<16x32xf32>
    %71 = arith.mulf %66, %70 : vector<16x32xf32>
    %72 = vector.broadcast %52 : vector<1x32xf32> to vector<16x32xf32>
    %73 = arith.mulf %71, %72 : vector<16x32xf32>
    %74 = vector.broadcast %53 : vector<1x32xf32> to vector<16x32xf32>
    %75 = arith.addf %73, %74 : vector<16x32xf32>
    %76 = arith.truncf %75 : vector<16x32xf32> to vector<16x32xbf16>
    %c0_29 = arith.constant 0 : index
    %c0_30 = arith.constant 0 : index
    %77 = vector.load %arg6[%c0_29, %c0_30] : memref<32x64xbf16, #tpu.memory_space<vmem>>, vector<32x64xbf16>
    %cst_31 = arith.constant dense<0.000000e+00> : vector<16x64xf32>
    %78 = tpu.matmul %76, %77, %cst_31 {dimension_numbers = #tpu.dot_dimension_numbers<[1], [0], [0], [1], [0, 0, 1, 1], [], []>} : vector<16x32xbf16>, vector<32x64xbf16>, vector<16x64xf32> -> vector<16x64xf32>
    %c0_32 = arith.constant 0 : index
    %c0_33 = arith.constant 0 : index
    %79 = vector.load %arg7[%c0_32, %c0_33] : memref<1x64xf32, #tpu.memory_space<vmem>>, vector<1x64xf32>
    %80 = vector.broadcast %79 : vector<1x64xf32> to vector<16x64xf32>
    %81 = arith.addf %78, %80 : vector<16x64xf32>
    %cst_34 = arith.constant 0.000000e+00 : f32
    %82 = vector.broadcast %cst_34 : f32 to vector<16x64xf32>
    %83 = arith.maximumf %81, %82 : vector<16x64xf32>
    %84 = arith.truncf %83 : vector<16x64xf32> to vector<16x64xbf16>
    %c0_35 = arith.constant 0 : index
    %c0_36 = arith.constant 0 : index
    %85 = vector.load %arg8[%c0_35, %c0_36] : memref<64x32xbf16, #tpu.memory_space<vmem>>, vector<64x32xbf16>
    %cst_37 = arith.constant dense<0.000000e+00> : vector<16x32xf32>
    %86 = tpu.matmul %84, %85, %cst_37 {dimension_numbers = #tpu.dot_dimension_numbers<[1], [0], [0], [1], [0, 0, 1, 1], [], []>} : vector<16x64xbf16>, vector<64x32xbf16>, vector<16x32xf32> -> vector<16x32xf32>
    %c0_38 = arith.constant 0 : index
    %c0_39 = arith.constant 0 : index
    %87 = vector.load %arg9[%c0_38, %c0_39] : memref<1x32xf32, #tpu.memory_space<vmem>>, vector<1x32xf32>
    %88 = vector.broadcast %87 : vector<1x32xf32> to vector<16x32xf32>
    %89 = arith.addf %86, %88 : vector<16x32xf32>
    %90 = arith.addf %75, %89 : vector<16x32xf32>
    %c0_40 = arith.constant 0 : index
    %c0_41 = arith.constant 0 : index
    %91 = vector.load %arg12[%c0_40, %c0_41] : memref<1x32xf32, #tpu.memory_space<vmem>>, vector<1x32xf32>
    %c0_42 = arith.constant 0 : index
    %c0_43 = arith.constant 0 : index
    %92 = vector.load %arg13[%c0_42, %c0_43] : memref<1x32xf32, #tpu.memory_space<vmem>>, vector<1x32xf32>
    %cst_44 = arith.constant dense<0.000000e+00> : vector<16xf32>
    %93 = vector.multi_reduction <add>, %90, %cst_44 [1] : vector<16x32xf32> to vector<16xf32>
    %94 = vector.shape_cast %93 : vector<16xf32> to vector<16x1xf32>
    %cst_45 = arith.constant 3.200000e+01 : f32
    %95 = vector.broadcast %cst_45 : f32 to vector<16x1xf32>
    %96 = arith.divf %94, %95 : vector<16x1xf32>
    %97 = vector.broadcast %96 : vector<16x1xf32> to vector<16x32xf32>
    %98 = arith.subf %90, %97 : vector<16x32xf32>
    %99 = arith.mulf %98, %98 : vector<16x32xf32>
    %cst_46 = arith.constant dense<0.000000e+00> : vector<16xf32>
    %100 = vector.multi_reduction <add>, %99, %cst_46 [1] : vector<16x32xf32> to vector<16xf32>
    %101 = vector.shape_cast %100 : vector<16xf32> to vector<16x1xf32>
    %cst_47 = arith.constant 3.200000e+01 : f32
    %102 = vector.broadcast %cst_47 : f32 to vector<16x1xf32>
    %103 = arith.divf %101, %102 : vector<16x1xf32>
    %104 = vector.broadcast %96 : vector<16x1xf32> to vector<16x32xf32>
    %105 = arith.subf %90, %104 : vector<16x32xf32>
    %cst_48 = arith.constant 9.99999974E-6 : f32
    %106 = vector.broadcast %cst_48 : f32 to vector<16x1xf32>
    %107 = arith.addf %103, %106 : vector<16x1xf32>
    %108 = math.rsqrt %107 : vector<16x1xf32>
    %109 = vector.broadcast %108 : vector<16x1xf32> to vector<16x32xf32>
    %110 = arith.mulf %105, %109 : vector<16x32xf32>
    %111 = vector.broadcast %91 : vector<1x32xf32> to vector<16x32xf32>
    %112 = arith.mulf %110, %111 : vector<16x32xf32>
    %113 = vector.broadcast %92 : vector<1x32xf32> to vector<16x32xf32>
    %114 = arith.addf %112, %113 : vector<16x32xf32>
    %115 = vector.shape_cast %114 : vector<16x32xf32> to vector<8x2x32xf32>
    %c0_49 = arith.constant 0 : index
    %c0_50 = arith.constant 0 : index
    %c0_51 = arith.constant 0 : index
    %116 = vector.load %arg14[%c0_49, %c0_50, %c0_51] : memref<8x2x32xf32, #tpu.memory_space<vmem>>, vector<8x2x32xf32>
    tpu.vector_store %arg14[%c0_49, %c0_50, %c0_51], %115 {strides = array<i32>} : memref<8x2x32xf32, #tpu.memory_space<vmem>>, vector<8x2x32xf32>,
    return
  }
}

module attributes {stable_mosaic.version = 11 : i64} {
  func.func @encoder_layer_kernel_headloop(%arg0: memref<2x8x32xf32, #tpu.memory_space<vmem>>, %arg1: memref<8x32xf32, #tpu.memory_space<vmem>>, %arg2: memref<32x96xbf16, #tpu.memory_space<vmem>>, %arg3: memref<1x96xf32, #tpu.memory_space<vmem>>, %arg4: memref<32x32xbf16, #tpu.memory_space<vmem>>, %arg5: memref<1x32xf32, #tpu.memory_space<vmem>>, %arg6: memref<32x64xbf16, #tpu.memory_space<vmem>>, %arg7: memref<1x64xf32, #tpu.memory_space<vmem>>, %arg8: memref<64x32xbf16, #tpu.memory_space<vmem>>, %arg9: memref<1x32xf32, #tpu.memory_space<vmem>>, %arg10: memref<1x32xf32, #tpu.memory_space<vmem>>, %arg11: memref<1x32xf32, #tpu.memory_space<vmem>>, %arg12: memref<1x32xf32, #tpu.memory_space<vmem>>, %arg13: memref<1x32xf32, #tpu.memory_space<vmem>>, %arg14: memref<2x8x32xf32, #tpu.memory_space<vmem>>) attributes {dimension_semantics = [], scalar_prefetch = 0 : i64, scratch_operands = 0 : i64, tpu.core_type = #tpu.core_type<tc>} {
    %c0 = arith.constant 0 : index
    %c0_0 = arith.constant 0 : index
    %c0_1 = arith.constant 0 : index
    %0 = vector.load %arg0[%c0, %c0_0, %c0_1] : memref<2x8x32xf32, #tpu.memory_space<vmem>>, vector<2x8x32xf32>
    %1 = vector.shape_cast %0 : vector<2x8x32xf32> to vector<16x32xf32>
    %c0_2 = arith.constant 0 : index
    %c0_3 = arith.constant 0 : index
    %2 = vector.load %arg1[%c0_2, %c0_3] : memref<8x32xf32, #tpu.memory_space<vmem>>, vector<8x32xf32>
    %3 = arith.truncf %1 : vector<16x32xf32> to vector<16x32xbf16>
    %c0_4 = arith.constant 0 : index
    %c0_5 = arith.constant 0 : index
    %4 = vector.load %arg2[%c0_4, %c0_5] : memref<32x96xbf16, #tpu.memory_space<vmem>>, vector<32x96xbf16>
    %cst = arith.constant dense<0.000000e+00> : vector<16x96xf32>
    %5 = tpu.matmul %3, %4, %cst {dimension_numbers = #tpu.dot_dimension_numbers<[1], [0], [0], [1], [0, 0, 1, 1], [], []>} : vector<16x32xbf16>, vector<32x96xbf16>, vector<16x96xf32> -> vector<16x96xf32>
    %c0_6 = arith.constant 0 : index
    %c0_7 = arith.constant 0 : index
    %6 = vector.load %arg3[%c0_6, %c0_7] : memref<1x96xf32, #tpu.memory_space<vmem>>, vector<1x96xf32>
    %7 = vector.broadcast %6 : vector<1x96xf32> to vector<16x96xf32>
    %8 = arith.addf %5, %7 : vector<16x96xf32>
    %9 = arith.truncf %2 : vector<8x32xf32> to vector<8x32xbf16>
    %c0_8 = arith.constant 0 : index
    %c0_9 = arith.constant 0 : index
    %10 = vector.load %arg2[%c0_8, %c0_9] : memref<32x96xbf16, #tpu.memory_space<vmem>>, vector<32x96xbf16>
    %cst_10 = arith.constant dense<0.000000e+00> : vector<8x96xf32>
    %11 = tpu.matmul %9, %10, %cst_10 {dimension_numbers = #tpu.dot_dimension_numbers<[1], [0], [0], [1], [0, 0, 1, 1], [], []>} : vector<8x32xbf16>, vector<32x96xbf16>, vector<8x96xf32> -> vector<8x96xf32>
    %12 = vector.shape_cast %8 : vector<16x96xf32> to vector<2x8x96xf32>
    %13 = vector.extract_strided_slice %12 {offsets = [0, 0, 0], sizes = [2, 8, 64], strides = [1, 1, 1]} : vector<2x8x96xf32> to vector<2x8x64xf32>
    %14 = vector.extract_strided_slice %11 {offsets = [0, 0], sizes = [8, 64], strides = [1, 1]} : vector<8x96xf32> to vector<8x64xf32>
    %15 = vector.shape_cast %14 : vector<8x64xf32> to vector<1x8x64xf32>
    %16 = vector.broadcast %15 : vector<1x8x64xf32> to vector<2x8x64xf32>
    %17 = arith.addf %13, %16 : vector<2x8x64xf32>
    %18 = vector.extract_strided_slice %12 {offsets = [0, 0, 64], sizes = [2, 8, 32], strides = [1, 1, 1]} : vector<2x8x96xf32> to vector<2x8x32xf32>
    %c0_11 = arith.constant 0 : index
    %c0_12 = arith.constant 0 : index
    %19 = vector.load %arg4[%c0_11, %c0_12] : memref<32x32xbf16, #tpu.memory_space<vmem>>, vector<32x32xbf16>
    %cst_13 = arith.constant 0.000000e+00 : f32
    %20 = vector.broadcast %cst_13 : f32 to vector<16x32xf32>
    %21 = vector.extract_strided_slice %17 {offsets = [0, 0, 0], sizes = [2, 8, 8], strides = [1, 1, 1]} : vector<2x8x64xf32> to vector<2x8x8xf32>
    %22 = arith.truncf %21 : vector<2x8x8xf32> to vector<2x8x8xbf16>
    %23 = vector.extract_strided_slice %17 {offsets = [0, 0, 32], sizes = [2, 8, 8], strides = [1, 1, 1]} : vector<2x8x64xf32> to vector<2x8x8xf32>
    %24 = arith.truncf %23 : vector<2x8x8xf32> to vector<2x8x8xbf16>
    %25 = vector.extract_strided_slice %18 {offsets = [0, 0, 0], sizes = [2, 8, 8], strides = [1, 1, 1]} : vector<2x8x32xf32> to vector<2x8x8xf32>
    %26 = arith.truncf %25 : vector<2x8x8xf32> to vector<2x8x8xbf16>
    "tpu.trace_start"() <{level = 10 : i32, message = "bqd,bkd->bqk"}> : () -> ()
    %cst_14 = arith.constant dense<0.000000e+00> : vector<2x8x8xf32>
    %27 = tpu.matmul %22, %24, %cst_14 {dimension_numbers = #tpu.dot_dimension_numbers<[2], [2], [1], [1], [0, 0, 0, 1, 1, 1], [0], [0]>} : vector<2x8x8xbf16>, vector<2x8x8xbf16>, vector<2x8x8xf32> -> vector<2x8x8xf32>
    "tpu.trace_stop"() : () -> ()
    %cst_15 = arith.constant dense<0xFF800000> : vector<2x8xf32>
    %28 = vector.multi_reduction <maximumf>, %27, %cst_15 [2] : vector<2x8x8xf32> to vector<2x8xf32>
    %29 = vector.shape_cast %28 : vector<2x8xf32> to vector<2x8x1xf32>
    %30 = vector.broadcast %29 : vector<2x8x1xf32> to vector<2x8x8xf32>
    %31 = arith.subf %27, %30 : vector<2x8x8xf32>
    %32 = math.exp %31 : vector<2x8x8xf32>
    %cst_16 = arith.constant dense<0.000000e+00> : vector<2x8xf32>
    %33 = vector.multi_reduction <add>, %32, %cst_16 [2] : vector<2x8x8xf32> to vector<2x8xf32>
    %34 = vector.shape_cast %33 : vector<2x8xf32> to vector<2x8x1xf32>
    %35 = tpu.reciprocal %34 {approx = true} : vector<2x8x1xf32> -> vector<2x8x1xf32>
    %36 = vector.broadcast %35 : vector<2x8x1xf32> to vector<2x8x8xf32>
    %37 = arith.mulf %32, %36 : vector<2x8x8xf32>
    %38 = arith.truncf %37 : vector<2x8x8xf32> to vector<2x8x8xbf16>
    "tpu.trace_start"() <{level = 10 : i32, message = "bqk,bkd->bqd"}> : () -> ()
    %cst_17 = arith.constant dense<0.000000e+00> : vector<2x8x8xf32>
    %39 = tpu.matmul %38, %26, %cst_17 {dimension_numbers = #tpu.dot_dimension_numbers<[2], [1], [1], [2], [0, 0, 0, 1, 1, 2], [0], [0]>} : vector<2x8x8xbf16>, vector<2x8x8xbf16>, vector<2x8x8xf32> -> vector<2x8x8xf32>
    "tpu.trace_stop"() : () -> ()
    %40 = vector.shape_cast %39 : vector<2x8x8xf32> to vector<16x8xf32>
    %41 = arith.truncf %40 : vector<16x8xf32> to vector<16x8xbf16>
    %42 = vector.extract_strided_slice %19 {offsets = [0, 0], sizes = [8, 32], strides = [1, 1]} : vector<32x32xbf16> to vector<8x32xbf16>
    %cst_18 = arith.constant dense<0.000000e+00> : vector<16x32xf32>
    %43 = tpu.matmul %41, %42, %cst_18 {dimension_numbers = #tpu.dot_dimension_numbers<[1], [0], [0], [1], [0, 0, 1, 1], [], []>} : vector<16x8xbf16>, vector<8x32xbf16>, vector<16x32xf32> -> vector<16x32xf32>
    %44 = arith.addf %20, %43 : vector<16x32xf32>
    %45 = vector.extract_strided_slice %17 {offsets = [0, 0, 8], sizes = [2, 8, 8], strides = [1, 1, 1]} : vector<2x8x64xf32> to vector<2x8x8xf32>
    %46 = arith.truncf %45 : vector<2x8x8xf32> to vector<2x8x8xbf16>
    %47 = vector.extract_strided_slice %17 {offsets = [0, 0, 40], sizes = [2, 8, 8], strides = [1, 1, 1]} : vector<2x8x64xf32> to vector<2x8x8xf32>
    %48 = arith.truncf %47 : vector<2x8x8xf32> to vector<2x8x8xbf16>
    %49 = vector.extract_strided_slice %18 {offsets = [0, 0, 8], sizes = [2, 8, 8], strides = [1, 1, 1]} : vector<2x8x32xf32> to vector<2x8x8xf32>
    %50 = arith.truncf %49 : vector<2x8x8xf32> to vector<2x8x8xbf16>
    "tpu.trace_start"() <{level = 10 : i32, message = "bqd,bkd->bqk"}> : () -> ()
    %cst_19 = arith.constant dense<0.000000e+00> : vector<2x8x8xf32>
    %51 = tpu.matmul %46, %48, %cst_19 {dimension_numbers = #tpu.dot_dimension_numbers<[2], [2], [1], [1], [0, 0, 0, 1, 1, 1], [0], [0]>} : vector<2x8x8xbf16>, vector<2x8x8xbf16>, vector<2x8x8xf32> -> vector<2x8x8xf32>
    "tpu.trace_stop"() : () -> ()
    %cst_20 = arith.constant dense<0xFF800000> : vector<2x8xf32>
    %52 = vector.multi_reduction <maximumf>, %51, %cst_20 [2] : vector<2x8x8xf32> to vector<2x8xf32>
    %53 = vector.shape_cast %52 : vector<2x8xf32> to vector<2x8x1xf32>
    %54 = vector.broadcast %53 : vector<2x8x1xf32> to vector<2x8x8xf32>
    %55 = arith.subf %51, %54 : vector<2x8x8xf32>
    %56 = math.exp %55 : vector<2x8x8xf32>
    %cst_21 = arith.constant dense<0.000000e+00> : vector<2x8xf32>
    %57 = vector.multi_reduction <add>, %56, %cst_21 [2] : vector<2x8x8xf32> to vector<2x8xf32>
    %58 = vector.shape_cast %57 : vector<2x8xf32> to vector<2x8x1xf32>
    %59 = tpu.reciprocal %58 {approx = true} : vector<2x8x1xf32> -> vector<2x8x1xf32>
    %60 = vector.broadcast %59 : vector<2x8x1xf32> to vector<2x8x8xf32>
    %61 = arith.mulf %56, %60 : vector<2x8x8xf32>
    %62 = arith.truncf %61 : vector<2x8x8xf32> to vector<2x8x8xbf16>
    "tpu.trace_start"() <{level = 10 : i32, message = "bqk,bkd->bqd"}> : () -> ()
    %cst_22 = arith.constant dense<0.000000e+00> : vector<2x8x8xf32>
    %63 = tpu.matmul %62, %50, %cst_22 {dimension_numbers = #tpu.dot_dimension_numbers<[2], [1], [1], [2], [0, 0, 0, 1, 1, 2], [0], [0]>} : vector<2x8x8xbf16>, vector<2x8x8xbf16>, vector<2x8x8xf32> -> vector<2x8x8xf32>
    "tpu.trace_stop"() : () -> ()
    %64 = vector.shape_cast %63 : vector<2x8x8xf32> to vector<16x8xf32>
    %65 = arith.truncf %64 : vector<16x8xf32> to vector<16x8xbf16>
    %66 = vector.extract_strided_slice %19 {offsets = [8, 0], sizes = [8, 32], strides = [1, 1]} : vector<32x32xbf16> to vector<8x32xbf16>
    %cst_23 = arith.constant dense<0.000000e+00> : vector<16x32xf32>
    %67 = tpu.matmul %65, %66, %cst_23 {dimension_numbers = #tpu.dot_dimension_numbers<[1], [0], [0], [1], [0, 0, 1, 1], [], []>} : vector<16x8xbf16>, vector<8x32xbf16>, vector<16x32xf32> -> vector<16x32xf32>
    %68 = arith.addf %44, %67 : vector<16x32xf32>
    %69 = vector.extract_strided_slice %17 {offsets = [0, 0, 16], sizes = [2, 8, 8], strides = [1, 1, 1]} : vector<2x8x64xf32> to vector<2x8x8xf32>
    %70 = arith.truncf %69 : vector<2x8x8xf32> to vector<2x8x8xbf16>
    %71 = vector.extract_strided_slice %17 {offsets = [0, 0, 48], sizes = [2, 8, 8], strides = [1, 1, 1]} : vector<2x8x64xf32> to vector<2x8x8xf32>
    %72 = arith.truncf %71 : vector<2x8x8xf32> to vector<2x8x8xbf16>
    %73 = vector.extract_strided_slice %18 {offsets = [0, 0, 16], sizes = [2, 8, 8], strides = [1, 1, 1]} : vector<2x8x32xf32> to vector<2x8x8xf32>
    %74 = arith.truncf %73 : vector<2x8x8xf32> to vector<2x8x8xbf16>
    "tpu.trace_start"() <{level = 10 : i32, message = "bqd,bkd->bqk"}> : () -> ()
    %cst_24 = arith.constant dense<0.000000e+00> : vector<2x8x8xf32>
    %75 = tpu.matmul %70, %72, %cst_24 {dimension_numbers = #tpu.dot_dimension_numbers<[2], [2], [1], [1], [0, 0, 0, 1, 1, 1], [0], [0]>} : vector<2x8x8xbf16>, vector<2x8x8xbf16>, vector<2x8x8xf32> -> vector<2x8x8xf32>
    "tpu.trace_stop"() : () -> ()
    %cst_25 = arith.constant dense<0xFF800000> : vector<2x8xf32>
    %76 = vector.multi_reduction <maximumf>, %75, %cst_25 [2] : vector<2x8x8xf32> to vector<2x8xf32>
    %77 = vector.shape_cast %76 : vector<2x8xf32> to vector<2x8x1xf32>
    %78 = vector.broadcast %77 : vector<2x8x1xf32> to vector<2x8x8xf32>
    %79 = arith.subf %75, %78 : vector<2x8x8xf32>
    %80 = math.exp %79 : vector<2x8x8xf32>
    %cst_26 = arith.constant dense<0.000000e+00> : vector<2x8xf32>
    %81 = vector.multi_reduction <add>, %80, %cst_26 [2] : vector<2x8x8xf32> to vector<2x8xf32>
    %82 = vector.shape_cast %81 : vector<2x8xf32> to vector<2x8x1xf32>
    %83 = tpu.reciprocal %82 {approx = true} : vector<2x8x1xf32> -> vector<2x8x1xf32>
    %84 = vector.broadcast %83 : vector<2x8x1xf32> to vector<2x8x8xf32>
    %85 = arith.mulf %80, %84 : vector<2x8x8xf32>
    %86 = arith.truncf %85 : vector<2x8x8xf32> to vector<2x8x8xbf16>
    "tpu.trace_start"() <{level = 10 : i32, message = "bqk,bkd->bqd"}> : () -> ()
    %cst_27 = arith.constant dense<0.000000e+00> : vector<2x8x8xf32>
    %87 = tpu.matmul %86, %74, %cst_27 {dimension_numbers = #tpu.dot_dimension_numbers<[2], [1], [1], [2], [0, 0, 0, 1, 1, 2], [0], [0]>} : vector<2x8x8xbf16>, vector<2x8x8xbf16>, vector<2x8x8xf32> -> vector<2x8x8xf32>
    "tpu.trace_stop"() : () -> ()
    %88 = vector.shape_cast %87 : vector<2x8x8xf32> to vector<16x8xf32>
    %89 = arith.truncf %88 : vector<16x8xf32> to vector<16x8xbf16>
    %90 = vector.extract_strided_slice %19 {offsets = [16, 0], sizes = [8, 32], strides = [1, 1]} : vector<32x32xbf16> to vector<8x32xbf16>
    %cst_28 = arith.constant dense<0.000000e+00> : vector<16x32xf32>
    %91 = tpu.matmul %89, %90, %cst_28 {dimension_numbers = #tpu.dot_dimension_numbers<[1], [0], [0], [1], [0, 0, 1, 1], [], []>} : vector<16x8xbf16>, vector<8x32xbf16>, vector<16x32xf32> -> vector<16x32xf32>
    %92 = arith.addf %68, %91 : vector<16x32xf32>
    %93 = vector.extract_strided_slice %17 {offsets = [0, 0, 24], sizes = [2, 8, 8], strides = [1, 1, 1]} : vector<2x8x64xf32> to vector<2x8x8xf32>
    %94 = arith.truncf %93 : vector<2x8x8xf32> to vector<2x8x8xbf16>
    %95 = vector.extract_strided_slice %17 {offsets = [0, 0, 56], sizes = [2, 8, 8], strides = [1, 1, 1]} : vector<2x8x64xf32> to vector<2x8x8xf32>
    %96 = arith.truncf %95 : vector<2x8x8xf32> to vector<2x8x8xbf16>
    %97 = vector.extract_strided_slice %18 {offsets = [0, 0, 24], sizes = [2, 8, 8], strides = [1, 1, 1]} : vector<2x8x32xf32> to vector<2x8x8xf32>
    %98 = arith.truncf %97 : vector<2x8x8xf32> to vector<2x8x8xbf16>
    "tpu.trace_start"() <{level = 10 : i32, message = "bqd,bkd->bqk"}> : () -> ()
    %cst_29 = arith.constant dense<0.000000e+00> : vector<2x8x8xf32>
    %99 = tpu.matmul %94, %96, %cst_29 {dimension_numbers = #tpu.dot_dimension_numbers<[2], [2], [1], [1], [0, 0, 0, 1, 1, 1], [0], [0]>} : vector<2x8x8xbf16>, vector<2x8x8xbf16>, vector<2x8x8xf32> -> vector<2x8x8xf32>
    "tpu.trace_stop"() : () -> ()
    %cst_30 = arith.constant dense<0xFF800000> : vector<2x8xf32>
    %100 = vector.multi_reduction <maximumf>, %99, %cst_30 [2] : vector<2x8x8xf32> to vector<2x8xf32>
    %101 = vector.shape_cast %100 : vector<2x8xf32> to vector<2x8x1xf32>
    %102 = vector.broadcast %101 : vector<2x8x1xf32> to vector<2x8x8xf32>
    %103 = arith.subf %99, %102 : vector<2x8x8xf32>
    %104 = math.exp %103 : vector<2x8x8xf32>
    %cst_31 = arith.constant dense<0.000000e+00> : vector<2x8xf32>
    %105 = vector.multi_reduction <add>, %104, %cst_31 [2] : vector<2x8x8xf32> to vector<2x8xf32>
    %106 = vector.shape_cast %105 : vector<2x8xf32> to vector<2x8x1xf32>
    %107 = tpu.reciprocal %106 {approx = true} : vector<2x8x1xf32> -> vector<2x8x1xf32>
    %108 = vector.broadcast %107 : vector<2x8x1xf32> to vector<2x8x8xf32>
    %109 = arith.mulf %104, %108 : vector<2x8x8xf32>
    %110 = arith.truncf %109 : vector<2x8x8xf32> to vector<2x8x8xbf16>
    "tpu.trace_start"() <{level = 10 : i32, message = "bqk,bkd->bqd"}> : () -> ()
    %cst_32 = arith.constant dense<0.000000e+00> : vector<2x8x8xf32>
    %111 = tpu.matmul %110, %98, %cst_32 {dimension_numbers = #tpu.dot_dimension_numbers<[2], [1], [1], [2], [0, 0, 0, 1, 1, 2], [0], [0]>} : vector<2x8x8xbf16>, vector<2x8x8xbf16>, vector<2x8x8xf32> -> vector<2x8x8xf32>
    "tpu.trace_stop"() : () -> ()
    %112 = vector.shape_cast %111 : vector<2x8x8xf32> to vector<16x8xf32>
    %113 = arith.truncf %112 : vector<16x8xf32> to vector<16x8xbf16>
    %114 = vector.extract_strided_slice %19 {offsets = [24, 0], sizes = [8, 32], strides = [1, 1]} : vector<32x32xbf16> to vector<8x32xbf16>
    %cst_33 = arith.constant dense<0.000000e+00> : vector<16x32xf32>
    %115 = tpu.matmul %113, %114, %cst_33 {dimension_numbers = #tpu.dot_dimension_numbers<[1], [0], [0], [1], [0, 0, 1, 1], [], []>} : vector<16x8xbf16>, vector<8x32xbf16>, vector<16x32xf32> -> vector<16x32xf32>
    %116 = arith.addf %92, %115 : vector<16x32xf32>
    %c0_34 = arith.constant 0 : index
    %c0_35 = arith.constant 0 : index
    %117 = vector.load %arg5[%c0_34, %c0_35] : memref<1x32xf32, #tpu.memory_space<vmem>>, vector<1x32xf32>
    %118 = vector.broadcast %117 : vector<1x32xf32> to vector<16x32xf32>
    %119 = arith.addf %116, %118 : vector<16x32xf32>
    %120 = arith.addf %1, %119 : vector<16x32xf32>
    %c0_36 = arith.constant 0 : index
    %c0_37 = arith.constant 0 : index
    %121 = vector.load %arg10[%c0_36, %c0_37] : memref<1x32xf32, #tpu.memory_space<vmem>>, vector<1x32xf32>
    %c0_38 = arith.constant 0 : index
    %c0_39 = arith.constant 0 : index
    %122 = vector.load %arg11[%c0_38, %c0_39] : memref<1x32xf32, #tpu.memory_space<vmem>>, vector<1x32xf32>
    %cst_40 = arith.constant dense<0.000000e+00> : vector<16xf32>
    %123 = vector.multi_reduction <add>, %120, %cst_40 [1] : vector<16x32xf32> to vector<16xf32>
    %124 = vector.shape_cast %123 : vector<16xf32> to vector<16x1xf32>
    %cst_41 = arith.constant 3.200000e+01 : f32
    %125 = vector.broadcast %cst_41 : f32 to vector<16x1xf32>
    %126 = arith.divf %124, %125 : vector<16x1xf32>
    %127 = vector.broadcast %126 : vector<16x1xf32> to vector<16x32xf32>
    %128 = arith.subf %120, %127 : vector<16x32xf32>
    %129 = arith.mulf %128, %128 : vector<16x32xf32>
    %cst_42 = arith.constant dense<0.000000e+00> : vector<16xf32>
    %130 = vector.multi_reduction <add>, %129, %cst_42 [1] : vector<16x32xf32> to vector<16xf32>
    %131 = vector.shape_cast %130 : vector<16xf32> to vector<16x1xf32>
    %cst_43 = arith.constant 3.200000e+01 : f32
    %132 = vector.broadcast %cst_43 : f32 to vector<16x1xf32>
    %133 = arith.divf %131, %132 : vector<16x1xf32>
    %134 = vector.broadcast %126 : vector<16x1xf32> to vector<16x32xf32>
    %135 = arith.subf %120, %134 : vector<16x32xf32>
    %cst_44 = arith.constant 9.99999974E-6 : f32
    %136 = vector.broadcast %cst_44 : f32 to vector<16x1xf32>
    %137 = arith.addf %133, %136 : vector<16x1xf32>
    %138 = math.rsqrt %137 : vector<16x1xf32>
    %139 = vector.broadcast %138 : vector<16x1xf32> to vector<16x32xf32>
    %140 = arith.mulf %135, %139 : vector<16x32xf32>
    %141 = vector.broadcast %121 : vector<1x32xf32> to vector<16x32xf32>
    %142 = arith.mulf %140, %141 : vector<16x32xf32>
    %143 = vector.broadcast %122 : vector<1x32xf32> to vector<16x32xf32>
    %144 = arith.addf %142, %143 : vector<16x32xf32>
    %145 = arith.truncf %144 : vector<16x32xf32> to vector<16x32xbf16>
    %c0_45 = arith.constant 0 : index
    %c0_46 = arith.constant 0 : index
    %146 = vector.load %arg6[%c0_45, %c0_46] : memref<32x64xbf16, #tpu.memory_space<vmem>>, vector<32x64xbf16>
    %cst_47 = arith.constant dense<0.000000e+00> : vector<16x64xf32>
    %147 = tpu.matmul %145, %146, %cst_47 {dimension_numbers = #tpu.dot_dimension_numbers<[1], [0], [0], [1], [0, 0, 1, 1], [], []>} : vector<16x32xbf16>, vector<32x64xbf16>, vector<16x64xf32> -> vector<16x64xf32>
    %c0_48 = arith.constant 0 : index
    %c0_49 = arith.constant 0 : index
    %148 = vector.load %arg7[%c0_48, %c0_49] : memref<1x64xf32, #tpu.memory_space<vmem>>, vector<1x64xf32>
    %149 = vector.broadcast %148 : vector<1x64xf32> to vector<16x64xf32>
    %150 = arith.addf %147, %149 : vector<16x64xf32>
    %cst_50 = arith.constant 0.000000e+00 : f32
    %151 = vector.broadcast %cst_50 : f32 to vector<16x64xf32>
    %152 = arith.maximumf %150, %151 : vector<16x64xf32>
    %153 = arith.truncf %152 : vector<16x64xf32> to vector<16x64xbf16>
    %c0_51 = arith.constant 0 : index
    %c0_52 = arith.constant 0 : index
    %154 = vector.load %arg8[%c0_51, %c0_52] : memref<64x32xbf16, #tpu.memory_space<vmem>>, vector<64x32xbf16>
    %cst_53 = arith.constant dense<0.000000e+00> : vector<16x32xf32>
    %155 = tpu.matmul %153, %154, %cst_53 {dimension_numbers = #tpu.dot_dimension_numbers<[1], [0], [0], [1], [0, 0, 1, 1], [], []>} : vector<16x64xbf16>, vector<64x32xbf16>, vector<16x32xf32> -> vector<16x32xf32>
    %c0_54 = arith.constant 0 : index
    %c0_55 = arith.constant 0 : index
    %156 = vector.load %arg9[%c0_54, %c0_55] : memref<1x32xf32, #tpu.memory_space<vmem>>, vector<1x32xf32>
    %157 = vector.broadcast %156 : vector<1x32xf32> to vector<16x32xf32>
    %158 = arith.addf %155, %157 : vector<16x32xf32>
    %159 = arith.addf %144, %158 : vector<16x32xf32>
    %c0_56 = arith.constant 0 : index
    %c0_57 = arith.constant 0 : index
    %160 = vector.load %arg12[%c0_56, %c0_57] : memref<1x32xf32, #tpu.memory_space<vmem>>, vector<1x32xf32>
    %c0_58 = arith.constant 0 : index
    %c0_59 = arith.constant 0 : index
    %161 = vector.load %arg13[%c0_58, %c0_59] : memref<1x32xf32, #tpu.memory_space<vmem>>, vector<1x32xf32>
    %cst_60 = arith.constant dense<0.000000e+00> : vector<16xf32>
    %162 = vector.multi_reduction <add>, %159, %cst_60 [1] : vector<16x32xf32> to vector<16xf32>
    %163 = vector.shape_cast %162 : vector<16xf32> to vector<16x1xf32>
    %cst_61 = arith.constant 3.200000e+01 : f32
    %164 = vector.broadcast %cst_61 : f32 to vector<16x1xf32>
    %165 = arith.divf %163, %164 : vector<16x1xf32>
    %166 = vector.broadcast %165 : vector<16x1xf32> to vector<16x32xf32>
    %167 = arith.subf %159, %166 : vector<16x32xf32>
    %168 = arith.mulf %167, %167 : vector<16x32xf32>
    %cst_62 = arith.constant dense<0.000000e+00> : vector<16xf32>
    %169 = vector.multi_reduction <add>, %168, %cst_62 [1] : vector<16x32xf32> to vector<16xf32>
    %170 = vector.shape_cast %169 : vector<16xf32> to vector<16x1xf32>
    %cst_63 = arith.constant 3.200000e+01 : f32
    %171 = vector.broadcast %cst_63 : f32 to vector<16x1xf32>
    %172 = arith.divf %170, %171 : vector<16x1xf32>
    %173 = vector.broadcast %165 : vector<16x1xf32> to vector<16x32xf32>
    %174 = arith.subf %159, %173 : vector<16x32xf32>
    %cst_64 = arith.constant 9.99999974E-6 : f32
    %175 = vector.broadcast %cst_64 : f32 to vector<16x1xf32>
    %176 = arith.addf %172, %175 : vector<16x1xf32>
    %177 = math.rsqrt %176 : vector<16x1xf32>
    %178 = vector.broadcast %177 : vector<16x1xf32> to vector<16x32xf32>
    %179 = arith.mulf %174, %178 : vector<16x32xf32>
    %180 = vector.broadcast %160 : vector<1x32xf32> to vector<16x32xf32>
    %181 = arith.mulf %179, %180 : vector<16x32xf32>
    %182 = vector.broadcast %161 : vector<1x32xf32> to vector<16x32xf32>
    %183 = arith.addf %181, %182 : vector<16x32xf32>
    %184 = vector.shape_cast %183 : vector<16x32xf32> to vector<2x8x32xf32>
    %c0_65 = arith.constant 0 : index
    %c0_66 = arith.constant 0 : index
    %c0_67 = arith.constant 0 : index
    %185 = vector.load %arg14[%c0_65, %c0_66, %c0_67] : memref<2x8x32xf32, #tpu.memory_space<vmem>>, vector<2x8x32xf32>
    tpu.vector_store %arg14[%c0_65, %c0_66, %c0_67], %184 {strides = array<i32>} : memref<2x8x32xf32, #tpu.memory_space<vmem>>, vector<2x8x32xf32>,
    return
  }
}

</mosaic_0001>

<bundles_post_ra>
// kernel: tpu_custom_call.1
= control target key start
LH: loop header
LB: loop body
LE: loop exit
PB: predicated region body
PF: predicated region fallthrough
CT: control target
= control target key end

     0   :  { %19 = vsyncpa [#allocation3], 0  ;;  %s1456_s0 = inlined_call_operand.vmem [shape: f32[2,8,32], index: 0, kind: input, shape index: {}]   ;;  %s1457_s1 = inlined_call_operand.hbm [shape: f32[8,32], index: 1, kind: input, shape index: {}]   ;;  %s1458_s2 = inlined_call_operand.vmem [shape: bf16[32,96], index: 2, kind: input, shape index: {}]   ;;  %s1459_s3 = inlined_call_operand.vmem [shape: f32[1,96], index: 3, kind: input, shape index: {}]   ;;  %s1460_s4 = inlined_call_operand.vmem [shape: bf16[32,32], index: 4, kind: input, shape index: {}]   ;;  %s1461_s5 = inlined_call_operand.vmem [shape: f32[1,32], index: 5, kind: input, shape index: {}]   ;;  %s1462_s6 = inlined_call_operand.hbm [shape: bf16[32,64], index: 6, kind: input, shape index: {}]   ;;  %s1463_s7 = inlined_call_operand.vmem [shape: f32[1,64], index: 7, kind: input, shape index: {}]   ;;  %s1464_s8 = inlined_call_operand.vmem [shape: bf16[64,32], index: 8, kind: input, shape index: {}]   ;;  %s1465_s9 = inlined_call_operand.vmem [shape: f32[1,32], index: 9, kind: input, shape index: {}]   ;;  %s1466_s10 = inlined_call_operand.vmem [shape: f32[1,32], index: 10, kind: input, shape index: {}]   ;;  %s1467_s11 = inlined_call_operand.vmem [shape: f32[1,32], index: 11, kind: input, shape index: {}]   ;;  %s1468_s12 = inlined_call_operand.vmem [shape: f32[1,32], index: 12, kind: input, shape index: {}]   ;;  %s1469_s13 = inlined_call_operand.vmem [shape: f32[1,32], index: 13, kind: input, shape index: {}]   ;;  %s1470_s14 = inlined_call_operand.hbm [shape: f32[2,8,32], index: 14, kind: output, shape index: {}]  }
   0x1   :  { %20 = vsyncpa [#allocation6], 0 }
   0x2   :  { %21 = vsyncpa [#allocation4], 0  ;;  %s29_s15 = sshll.u32 %s1457_s1, 4  ;;  %s1150_s16 = smov [#allocation2]   ;;  %s30_s15 = int_to_ptr.hbm [resolvable:$true] %s29_s15 }
   0x3   :  { %s31_s17 = sshll.u32 %s1150_s16, 4  ;;  %s47_s20 = sshll.u32 %s1462_s6, 4  ;;  %s32_s17 = int_to_ptr.vmem [resolvable:$true] %s31_s17  ;;  %s48_s20 = int_to_ptr.hbm [resolvable:$true] %s47_s20 }
   0x4   :  { %34 = dma.hbm_to_vmem [thread:$0]  %s30_s15, 128, %s32_s17, [#allocation3]  }
   0x5   :  { %s1151_s21 = smov [#allocation5]   ;;  %s1152_s23 = smov 64  }
   0x6   :  { %s49_s22 = sshll.u32 %s1151_s21, 4  ;;  %s1153_s24 = smov 4   ;;  %s50_s22 = int_to_ptr.vmem [resolvable:$true] %s49_s22 }
   0x7   :  { %55 = dma.hbm_to_vmem [thread:$0]  %s48_s20, 256, %s50_s22, [#allocation6], %s1152_s23, %s1152_s23, %s1153_s24  }
   0x8   :  { %1144 = dma.done.wait [#allocation3], 128  }
   0x9   :  { %1145 = vsyncadd [#allocation3], 4294967168 }
   0xa   :  { %1146 = dma.done.wait [#allocation6], 256  }
   0xb   :  { %1147 = vsyncadd [#allocation6], 4294967040  ;;  %v997_v0 = vld [vmem:[%s1458_s2 + $0x8] sm:$0xff]  ;;  %v996_v1 = vld [vmem:[%s1458_s2] sm:$0xff]  ;;  %vm103_vm0 = vcmask 261120   ;;  %s1155_s16 = smov 96  }
   0xc   :  { %v1260_v2 = vld [vmem:[%s1456_s0] sm:$0xff]  ;;  %v1265_v3 = vld [vmem:[%s1456_s0 + $0x8] sm:$0xff]  ;;  %113 = vmatpush.bf16.msra.mxu0 %v997_v0  ;;  %131 = vmatpush.bf16.msra.mxu1 %v997_v0  ;;  %s1154_s0 = smov 120   ;;  %vm153_vm1 = vcmask 64512   ;;  %s1157_s17 = smov 56   ;;  %vm229_vm2 = vcmask 1043456  }
   0xd   :  { %v81_v4 = vld [vmem:[#allocation2] sm:$0xff]  ;;  %v82_v5 = vpack.c.bf16 %v1265_v3, %v1260_v2  ;;  %s1158_s18 = smov 112   ;;  %s1159_s19 = smov 48   ;;  %vm842_vm10 = vcmask 523264  }
   0xe   :  { %v121_v6 = vpack.c.bf16 %v81_v4, %v81_v4  ;;  %v1022_v7 = vld [vmem:[%s1459_s3] ss:$0 sm:$0xff]  ;;  %s1156_s3 = smov 88   ;;  %s1160_s20 = smov 72   ;;  %v141_v0 = vld [vmem:[%s1460_s4 + $0x4] sm:$0xf] }
   0xf   :  { %s1161_s21 = smov 104   ;;  %s1162_s22 = smov 80  }
  0x10   :  { %114 = vmatpush.bf16.msra.mxu0 %v996_v1  ;;  %132 = vmatpush.bf16.msra.mxu1 %v996_v1  ;;  %v388_v1 = vsel %vm229_vm2, %v141_v0, 0  ;;  %s1163_s26 = smov 40   ;;  %s926_s27 = sshll.u32 %s1470_s14, 4  ;;  %s927_s27 = int_to_ptr.hbm [resolvable:$true] %s926_s27 }
  0x11   :  { %s1167_s28 = smov 8  }
  0x13   :  { %948 = vmatmul.msk.bf16.vlgmr.msra.gmra.mxu0 %vm103_vm0, %v82_v5  ;;  %949 = vmatmul.msk.bf16.vlgmr.msra.gmra.mxu1 %vm103_vm0, %v121_v6 }
  0x90   :  { %v116_v8 = vpop.f32.mrf.mxu0  ;;  %v134_v9 = vpop.f32.mrf.mxu1 }
  0x91   :  { %v117_v10 = vadd.f32 %v1022_v7, %v116_v8 }
  0x93   :  { %v138_v11 = vadd.f32 %v134_v9, %v117_v10  ;;  %v146_v42 = vpack.c.bf16 %v117_v10, %v117_v10 }
  0x95   :  { %v144_v12 = vpack.c.bf16 %v138_v11, %v138_v11  ;;  %v222_v43 = vunpack.c.l.b16 %v146_v42 }
  0x97   :  { %v149_v13 = vunpack.c.l.b16 %v144_v12  ;;  %v1296_v44 = vpack.c.b16 %v222_v43, %v222_v43 }
  0x98   :  { %v118_v14 = vpop.f32.mrf.mxu0  ;;  %v136_v15 = vpop.f32.mrf.mxu1 }
  0x99   :  { %v1274_v16 = vpack.c.b16 %v149_v13, %v149_v13  ;;  %v119_v17 = vadd.f32 %v1022_v7, %v118_v14  ;;  %v140_v13 = vld [vmem:[%s1460_s4] sm:$0xf] }
  0x9a   :  { %v408_v14 = vsel %vm229_vm2, %v140_v13, 0 }
  0x9b   :  { %v139_v18 = vadd.f32 %v134_v9, %v119_v17  ;;  %271 = vrot.lane.b32.xlu1 %v1274_v16, %s1154_s0  ;;  %151 = vrot.lane.b32.xlu0 %v1274_v16, %s1155_s16  ;;  %v147_v46 = vpack.c.bf16 %v119_v17, %v119_v17 }
  0x9d   :  { %v145_v19 = vpack.c.bf16 %v139_v18, %v139_v18  ;;  %v247_v47 = vunpack.c.l.b16 %v147_v46 }
  0x9f   :  { %v174_v20 = vunpack.c.l.b16 %v145_v19  ;;  %v1301_v48 = vpack.c.b16 %v247_v47, %v247_v47 }
  0xa1   :  { %v1278_v21 = vpack.c.b16 %v174_v20, %v174_v20 }
  0xa3   :  { %296 = vrot.lane.b32.xlu2 %v1278_v21, %s1156_s3  ;;  %176 = vrot.lane.b32.xlu1 %v1278_v21, %s1155_s16 }
  0xa4   :  { %273 = vrot.lane.b32.xlu0 %v1274_v16, %s1156_s3 }
  0xab   :  { %294 = vrot.lane.b32.xlu2 %v1278_v21, %s1154_s0 }
  0xfd   :  { %v297_v25 = vpop.permute.xlu2 %296 }
  0xfe   :  { %v302_v30 = vsel %vm153_vm1, %v297_v25, 0 }
 0x105   :  { %v295_v31 = vpop.permute.xlu2 %294 }
 0x10d   :  { %v272_v22 = vpop.permute.xlu1 %271  ;;  %v152_v23 = vpop.permute.xlu0 %151 }
 0x10e   :  { %v158_v24 = vsel %vm153_vm1, %v152_v23, 0 }
 0x10f   :  { %167 = vmatpush.bf16.xpose.msra.mxu2 %v158_v24 }
 0x115   :  { %v177_v26 = vpop.permute.xlu1 %176 }
 0x116   :  { %v274_v27 = vpop.permute.xlu0 %273  ;;  %950 = vmatmul.msk.bf16.vlgmr.msra.gmra.mxu2 %vm153_vm1, %v144_v12  ;;  %v182_v28 = vsel %vm153_vm1, %v177_v26, 0 }
 0x117   :  { %191 = vmatpush.bf16.xpose.msra.mxu3 %v182_v28  ;;  %v279_v29 = vsel %vm153_vm1, %v274_v27, 0 }
 0x118   :  { %288 = vmatpush.bf16.xpose.msrb.mxu2 %v279_v29 }
 0x11e   :  { %951 = vmatmul.msk.bf16.vlgmr.msra.gmra.mxu3 %vm153_vm1, %v145_v19 }
 0x11f   :  { %311 = vmatpush.bf16.xpose.msrb.mxu3 %v302_v30 }
 0x120   :  { %397 = vmatpush.bf16.msra.mxu2 %v388_v1 }
 0x126   :  { %954 = vmatmul.msk.bf16.vlgmr.msrb.gmra.mxu2 %vm153_vm1, %v272_v22 }
 0x127   :  { %417 = vmatpush.bf16.msra.mxu3 %v408_v14 }
 0x12e   :  { %955 = vmatmul.msk.bf16.vlgmr.msrb.gmra.mxu3 %vm153_vm1, %v295_v31 }
 0x199   :  { %v169_v32 = vpop.f32.mrf.mxu2 }
 0x19a   :  { %v197_v33 = vsel %vm153_vm1, %v169_v32, -inf }
 0x19b   :  { %198 = vmax.xlane.f32.xlu0 %v197_v33 }
 0x1a1   :  { %v171_v34 = vpop.f32.mrf.mxu2  ;;  %v193_v35 = vpop.f32.mrf.mxu3 }
 0x1a2   :  { %v200_v45 = vsel %vm153_vm1, %v193_v35, -inf }
 0x1a9   :  { %v195_v36 = vpop.f32.mrf.mxu3  ;;  %v290_v37 = vpop.f32.mrf.mxu2 }
 0x1aa   :  { %v317_v38 = vsel %vm153_vm1, %v290_v37, -inf }
 0x1ab   :  { %318 = vmax.xlane.f32.xlu1 %v317_v38 }
 0x1b1   :  { %v292_v39 = vpop.f32.mrf.mxu2  ;;  %v1294_v40 = vpop.f32.mrf.mxu3 }
 0x1b2   :  { %v320_v63 = vsel %vm153_vm1, %v1294_v40, -inf }
 0x1b9   :  { %v315_v41 = vpop.f32.mrf.mxu3 }
 0x1c4   :  { %341 = vrot.lane.b32.xlu1 %v1296_v44, %s1157_s17 }
 0x1ee   :  { %201 = vmax.xlane.f32.xlu1 %v200_v45 }
 0x207   :  { %249 = vrot.lane.b32.xlu1 %v1301_v48, %s1152_s23 }
 0x20e   :  { %v199_v49 = vpop.xlane.xlu0 %198 }
 0x20f   :  { %v203_v50 = vsub.f32 %v169_v32, %v199_v49  ;;  %447 = vrot.lane.b32.xlu1 %v1278_v21, %s1158_s18 }
 0x211   :  { %v205_v51 = vmul.f32 1.442695, %v203_v50 }
 0x213   :  { %1030 = vpow2.f32 %v205_v51 }
 0x217   :  { %494 = vrot.lane.b32.xlu1 %v1296_v44, %s1159_s19 }
 0x219   :  { %v1031_v52 = vpop.eup %1030 }
 0x21a   :  { %v209_v53 = vsel %vm153_vm1, %v1031_v52, 0.0 }
 0x21b   :  { %210 = vadd.xlane.f32.xlu2 %v209_v53 }
 0x21e   :  { %v319_v54 = vpop.xlane.xlu1 %318 }
 0x21f   :  { %v323_v55 = vsub.f32 %v290_v37, %v319_v54  ;;  %561 = vrot.lane.b32.xlu1 %v1274_v16, %s1160_s20 }
 0x221   :  { %v325_v56 = vmul.f32 1.442695, %v323_v55 }
 0x223   :  { %1032 = vpow2.f32 %v325_v56 }
 0x227   :  { %584 = vrot.lane.b32.xlu1 %v1278_v21, %s1160_s20 }
 0x229   :  { %v1033_v57 = vpop.eup %1032 }
 0x22a   :  { %v329_v58 = vsel %vm153_vm1, %v1033_v57, 0.0 }
 0x22b   :  { %330 = vadd.xlane.f32.xlu0 %v329_v58 }
 0x22f   :  { %559 = vrot.lane.b32.xlu1 %v1274_v16, %s1161_s21 }
 0x233   :  { %224 = vrot.lane.b32.xlu2 %v1296_v44, %s1152_s23 }
 0x236   :  { %v342_v59 = vpop.permute.xlu1 %341 }
 0x237   :  { %582 = vrot.lane.b32.xlu1 %v1278_v21, %s1161_s21  ;;  %v347_v19 = vsel %vm229_vm2, %v342_v59, 0 }
 0x23b   :  { %424 = vrot.lane.b32.xlu2 %v1274_v16, %s1158_s18 }
 0x23f   :  { %515 = vrot.lane.b32.xlu1 %v1301_v48, %s1159_s19  ;;  %426 = vrot.lane.b32.xlu0 %v1274_v16, %s1162_s22 }
 0x261   :  { %v202_v60 = vpop.xlane.xlu1 %201 }
 0x262   :  { %v204_v61 = vsub.f32 %v193_v35, %v202_v60 }
 0x264   :  { %v207_v62 = vmul.f32 1.442695, %v204_v61 }
 0x266   :  { %1034 = vpow2.f32 %v207_v62 }
 0x269   :  { %321 = vmax.xlane.f32.xlu0 %v320_v63 }
 0x26c   :  { %v1035_v4 = vpop.eup %1034 }
 0x26d   :  { %v212_v5 = vsel %vm153_vm1, %v1035_v4, 0.0 }
 0x26e   :  { %213 = vadd.xlane.f32.xlu2 %v212_v5 }
 0x279   :  { %v250_v6 = vpop.permute.xlu1 %249 }
 0x27a   :  { %v255_v7 = vsel %vm229_vm2, %v250_v6, 0 }
 0x27b   :  { %264 = vmatpush.bf16.msrb.mxu1 %v255_v7 }
 0x281   :  { %v1327_v8 = vpop.permute.xlu1 %447 }
 0x286   :  { %362 = vrot.lane.b32.xlu2 %v1301_v48, %s1157_s17 }
 0x289   :  { %v495_v9 = vpop.permute.xlu1 %494 }
 0x28a   :  { %v500_v10 = vsel %vm229_vm2, %v495_v9, 0 }
 0x28b   :  { %509 = vmatpush.bf16.msrb.mxu2 %v500_v10 }
 0x28e   :  { %v211_v11 = vpop.xlane.xlu2 %210 }
 0x28f   :  { %1036 = vrcp.f32 %v211_v11 }
 0x291   :  { %v1332_v12 = vpop.permute.xlu1 %561 }
 0x292   :  { %v567_v61 = vsel %vm153_vm1, %v1332_v12, 0 }
 0x295   :  { %v1037_v15 = vpop.eup %1036 }
 0x296   :  { %v217_v16 = vmul.f32 %v1037_v15, %v1031_v52  ;;  %v225_v17 = vpop.permute.xlu2 %224 }
 0x297   :  { %v231_v18 = vsel %vm229_vm2, %v225_v17, 0 }
 0x298   :  { %240 = vmatpush.bf16.msrb.mxu0 %v231_v18  ;;  %v219_v20 = vpack.c.bf16 %v217_v16, %v217_v16 }
 0x299   :  { %v1340_v22 = vpop.permute.xlu1 %584 }
 0x29a   :  { %v590_v9 = vsel %vm153_vm1, %v1340_v22, 0 }
 0x29b   :  { %952 = vmatmul.msk.bf16.vlgmr.msrb.gmra.mxu0 %vm153_vm1, %v219_v20 }
 0x29c   :  { %356 = vmatpush.bf16.msra.mxu0 %v347_v19 }
 0x29e   :  { %v331_v23 = vpop.xlane.xlu0 %330  ;;  %v425_v33 = vpop.permute.xlu2 %424 }
 0x29f   :  { %1038 = vrcp.f32 %v331_v23 }
 0x2a1   :  { %v560_v24 = vpop.permute.xlu1 %559 }
 0x2a5   :  { %v1039_v25 = vpop.eup %1038 }
 0x2a6   :  { %v337_v26 = vmul.f32 %v1039_v25, %v1033_v57 }
 0x2a8   :  { %v339_v27 = vpack.c.bf16 %v337_v26, %v337_v26 }
 0x2a9   :  { %v1343_v28 = vpop.permute.xlu1 %582 }
 0x2ab   :  { %956 = vmatmul.msk.bf16.vlgmr.msra.gmra.mxu0 %vm153_vm1, %v339_v27 }
 0x2b1   :  { %v516_v29 = vpop.permute.xlu1 %515  ;;  %v427_v30 = vpop.permute.xlu0 %426 }
 0x2b2   :  { %v521_v31 = vsel %vm229_vm2, %v516_v29, 0  ;;  %v432_v32 = vsel %vm153_vm1, %v427_v30, 0 }
 0x2b3   :  { %441 = vmatpush.bf16.xpose.msrb.mxu0 %v432_v32  ;;  %530 = vmatpush.bf16.msrb.mxu3 %v521_v31 }
 0x2bb   :  { %960 = vmatmul.msk.bf16.vlgmr.msrb.gmra.mxu0 %vm153_vm1, %v425_v33 }
 0x2dc   :  { %v322_v34 = vpop.xlane.xlu0 %321 }
 0x2dd   :  { %v324_v35 = vsub.f32 %v1294_v40, %v322_v34 }
 0x2df   :  { %v327_v36 = vmul.f32 1.442695, %v324_v35 }
 0x2e1   :  { %1040 = vpow2.f32 %v327_v36  ;;  %v214_v37 = vpop.xlane.xlu2 %213 }
 0x2e2   :  { %1042 = vrcp.f32 %v214_v37 }
 0x2e7   :  { %v1041_v38 = vpop.eup %1040 }
 0x2e8   :  { %v1043_v39 = vpop.eup %1042  ;;  %v332_v41 = vsel %vm153_vm1, %v1041_v38, 0.0 }
 0x2e9   :  { %v218_v42 = vmul.f32 %v1043_v39, %v1035_v4  ;;  %v363_v43 = vpop.permute.xlu2 %362  ;;  %333 = vadd.xlane.f32.xlu0 %v332_v41 }
 0x2ea   :  { %v368_v45 = vsel %vm229_vm2, %v363_v43, 0 }
 0x2eb   :  { %377 = vmatpush.bf16.msra.mxu1 %v368_v45  ;;  %v220_v46 = vpack.c.bf16 %v218_v42, %v218_v42 }
 0x2ed   :  { %953 = vmatmul.msk.bf16.vlgmr.msrb.gmra.mxu1 %vm153_vm1, %v220_v46 }
 0x2fd   :  { %449 = vrot.lane.b32.xlu0 %v1278_v21, %s1162_s22 }
 0x318   :  { %v242_v40 = vpop.f32.mrf.mxu0 }
 0x320   :  { %v244_v47 = vpop.f32.mrf.mxu0 }
 0x328   :  { %v358_v49 = vpop.f32.mrf.mxu0 }
 0x330   :  { %v360_v50 = vpop.f32.mrf.mxu0 }
 0x338   :  { %v443_v51 = vpop.f32.mrf.mxu0 }
 0x339   :  { %v470_v52 = vsel %vm153_vm1, %v443_v51, -inf }
 0x33a   :  { %471 = vmax.xlane.f32.xlu2 %v470_v52 }
 0x340   :  { %v445_v53 = vpop.f32.mrf.mxu0 }
 0x35c   :  { %v334_v54 = vpop.xlane.xlu0 %333 }
 0x35d   :  { %1044 = vrcp.f32 %v334_v54  ;;  %v142_v54 = vld [vmem:[%s1460_s4 + $0x8] sm:$0xf] }
 0x363   :  { %v1045_v55 = vpop.eup %1044 }
 0x364   :  { %v338_v56 = vmul.f32 %v1045_v55, %v1041_v38  ;;  %v541_v55 = vsel %vm229_vm2, %v142_v54, 0 }
 0x365   :  { %550 = vmatpush.bf16.msra.mxu0 %v541_v55 }
 0x366   :  { %v340_v57 = vpack.c.bf16 %v338_v56, %v338_v56 }
 0x368   :  { %957 = vmatmul.msk.bf16.vlgmr.msra.gmra.mxu1 %vm153_vm1, %v340_v57 }
 0x36a   :  { %v266_v58 = vpop.f32.mrf.mxu1 }
 0x36b   :  { %v270_v59 = vpack.c.bf16 %v266_v58, %v242_v40 }
 0x36d   :  { %959 = vmatmul.msk.bf16.vlgmr.msra.gmra.mxu3 %vm153_vm1, %v270_v59 }
 0x36f   :  { %v450_v21 = vpop.permute.xlu0 %449 }
 0x370   :  { %v455_v60 = vsel %vm153_vm1, %v450_v21, 0 }
 0x371   :  { %464 = vmatpush.bf16.xpose.msrb.mxu1 %v455_v60 }
 0x372   :  { %v268_v62 = vpop.f32.mrf.mxu1 }
 0x378   :  { %961 = vmatmul.msk.bf16.vlgmr.msrb.gmra.mxu1 %vm153_vm1, %v1327_v8 }
 0x379   :  { %576 = vmatpush.bf16.xpose.msra.mxu1 %v567_v61 }
 0x388   :  { %965 = vmatmul.msk.bf16.vlgmr.msra.gmra.mxu1 %vm153_vm1, %v560_v24 }
 0x3ad   :  { %v472_v63 = vpop.xlane.xlu2 %471 }
 0x3ae   :  { %v476_v0 = vsub.f32 %v443_v51, %v472_v63 }
 0x3b0   :  { %v478_v1 = vmul.f32 1.442695, %v476_v0 }
 0x3b2   :  { %1046 = vpow2.f32 %v478_v1 }
 0x3b8   :  { %v1047_v4 = vpop.eup %1046 }
 0x3b9   :  { %v482_v5 = vsel %vm153_vm1, %v1047_v4, 0.0 }
 0x3ba   :  { %483 = vadd.xlane.f32.xlu0 %v482_v5 }
 0x3e5   :  { %v379_v6 = vpop.f32.mrf.mxu1 }
 0x3e6   :  { %v383_v7 = vpack.c.bf16 %v379_v6, %v358_v49 }
 0x3e8   :  { %958 = vmatmul.msk.bf16.vlgmr.msra.gmra.mxu2 %vm153_vm1, %v383_v7 }
 0x3e9   :  { %599 = vmatpush.bf16.xpose.msra.mxu2 %v590_v9  ;;  %v143_v9 = vld [vmem:[%s1460_s4 + $0xc] sm:$0xf] }
 0x3ed   :  { %v381_v10 = vpop.f32.mrf.mxu1 }
 0x3ee   :  { %v676_v10 = vsel %vm229_vm2, %v143_v9, 0 }
 0x3ef   :  { %685 = vmatpush.bf16.msrb.mxu1 %v676_v10 }
 0x3f0   :  { %v419_v56 = vpop.f32.mrf.mxu3 }
 0x3f5   :  { %v466_v8 = vpop.f32.mrf.mxu1 }
 0x3f6   :  { %v473_v11 = vsel %vm153_vm1, %v466_v8, -inf }
 0x3f7   :  { %474 = vmax.xlane.f32.xlu2 %v473_v11 }
 0x3f8   :  { %v421_v57 = vpop.f32.mrf.mxu3 }
 0x3fd   :  { %v468_v12 = vpop.f32.mrf.mxu1 }
 0x405   :  { %v578_v13 = vpop.f32.mrf.mxu1 }
 0x406   :  { %v605_v14 = vsel %vm153_vm1, %v578_v13, -inf }
 0x407   :  { %606 = vmax.xlane.f32.xlu2 %v605_v14  ;;  %v1023_v14 = vld [vmem:[%s1461_s5] ss:$0 sm:$0xff] }
 0x40d   :  { %v580_v15 = vpop.f32.mrf.mxu1 }
 0x42d   :  { %v484_v16 = vpop.xlane.xlu0 %483 }
 0x42e   :  { %1048 = vrcp.f32 %v484_v16 }
 0x434   :  { %v1049_v17 = vpop.eup %1048 }
 0x435   :  { %v490_v18 = vmul.f32 %v1049_v17, %v1047_v4 }
 0x437   :  { %v492_v19 = vpack.c.bf16 %v490_v18, %v490_v18 }
 0x439   :  { %962 = vmatmul.msk.bf16.vlgmr.msrb.gmra.mxu2 %vm153_vm1, %v492_v19 }
 0x449   :  { %966 = vmatmul.msk.bf16.vlgmr.msra.gmra.mxu2 %vm153_vm1, %v1343_v28 }
 0x46a   :  { %v475_v20 = vpop.xlane.xlu2 %474 }
 0x46b   :  { %v477_v22 = vsub.f32 %v466_v8, %v475_v20  ;;  %v399_v32 = vpop.f32.mrf.mxu2 }
 0x46c   :  { %v420_v5 = vadd.f32 %v419_v56, %v399_v32 }
 0x46d   :  { %v480_v23 = vmul.f32 1.442695, %v477_v22 }
 0x46f   :  { %1050 = vpow2.f32 %v480_v23 }
 0x473   :  { %v1375_v33 = vpop.f32.mrf.mxu2 }
 0x474   :  { %v422_v18 = vadd.f32 %v421_v57, %v1375_v33 }
 0x475   :  { %v1051_v24 = vpop.eup %1050 }
 0x476   :  { %v485_v25 = vsel %vm153_vm1, %v1051_v24, 0.0 }
 0x477   :  { %486 = vadd.xlane.f32.xlu0 %v485_v25 }
 0x47a   :  { %v607_v26 = vpop.xlane.xlu2 %606 }
 0x47b   :  { %v611_v27 = vsub.f32 %v578_v13, %v607_v26 }
 0x47d   :  { %v613_v29 = vmul.f32 1.442695, %v611_v27 }
 0x47f   :  { %1052 = vpow2.f32 %v613_v29  ;;  %v1164_v29 = vmov 32.0  }
 0x485   :  { %v1053_v30 = vpop.eup %1052 }
 0x486   :  { %v617_v31 = vsel %vm153_vm1, %v1053_v30, 0.0 }
 0x487   :  { %618 = vadd.xlane.f32.xlu1 %v617_v31 }
 0x4bc   :  { %v511_v28 = vpop.f32.mrf.mxu2 }
 0x4c4   :  { %v513_v34 = vpop.f32.mrf.mxu2 }
 0x4cc   :  { %v601_v35 = vpop.f32.mrf.mxu2 }
 0x4cd   :  { %v608_v36 = vsel %vm153_vm1, %v601_v35, -inf }
 0x4ce   :  { %609 = vmax.xlane.f32.xlu0 %v608_v36 }
 0x4d4   :  { %v603_v37 = vpop.f32.mrf.mxu2 }
 0x4e2   :  { %629 = vrot.lane.b32.xlu0 %v1296_v44, %s1163_s26 }
 0x4ea   :  { %v487_v38 = vpop.xlane.xlu0 %486 }
 0x4eb   :  { %1054 = vrcp.f32 %v487_v38 }
 0x4f1   :  { %v1055_v39 = vpop.eup %1054 }
 0x4f2   :  { %v491_v41 = vmul.f32 %v1055_v39, %v1051_v24 }
 0x4f4   :  { %v493_v42 = vpack.c.bf16 %v491_v41, %v491_v41 }
 0x4f6   :  { %963 = vmatmul.msk.bf16.vlgmr.msrb.gmra.mxu3 %vm153_vm1, %v493_v42 }
 0x4fa   :  { %v619_v40 = vpop.xlane.xlu1 %618 }
 0x541   :  { %v610_v43 = vpop.xlane.xlu0 %609 }
 0x542   :  { %v612_v45 = vsub.f32 %v601_v35, %v610_v43 }
 0x544   :  { %v615_v46 = vmul.f32 1.442695, %v612_v45  ;;  %v999_v45 = vld [vmem:[#allocation5 + $0x8] sm:$0xff] }
 0x545   :  { %795 = vmatpush.bf16.msrb.mxu2 %v999_v45 }
 0x546   :  { %1056 = vpow2.f32 %v615_v46 }
 0x547   :  { %1058 = vrcp.f32 %v619_v40 }
 0x54c   :  { %v1057_v47 = vpop.eup %1056 }
 0x54d   :  { %v620_v49 = vsel %vm153_vm1, %v1057_v47, 0.0  ;;  %v1059_v50 = vpop.eup %1058 }
 0x54e   :  { %621 = vadd.xlane.f32.xlu2 %v620_v49  ;;  %v625_v51 = vmul.f32 %v1059_v50, %v1053_v30  ;;  %v998_v49 = vld [vmem:[#allocation5] sm:$0xff] }
 0x54f   :  { %796 = vmatpush.bf16.msrb.mxu2 %v998_v49 }
 0x550   :  { %v627_v53 = vpack.c.bf16 %v625_v51, %v625_v51 }
 0x554   :  { %v630_v44 = vpop.permute.xlu0 %629 }
 0x555   :  { %v635_v52 = vsel %vm229_vm2, %v630_v44, 0 }
 0x556   :  { %644 = vmatpush.bf16.msra.mxu3 %v635_v52 }
 0x559   :  { %967 = vmatmul.msk.bf16.vlgmr.msra.gmra.mxu3 %vm153_vm1, %v627_v53 }
 0x566   :  { %650 = vrot.lane.b32.xlu2 %v1301_v48, %s1163_s26 }
 0x579   :  { %v532_v58 = vpop.f32.mrf.mxu3 }
 0x57a   :  { %v536_v59 = vpack.c.bf16 %v532_v58, %v511_v28 }
 0x57c   :  { %964 = vmatmul.msk.bf16.vlgmr.msra.gmra.mxu0 %vm153_vm1, %v536_v59 }
 0x581   :  { %v534_v21 = vpop.f32.mrf.mxu3 }
 0x5c1   :  { %v622_v60 = vpop.xlane.xlu2 %621 }
 0x5c2   :  { %1060 = vrcp.f32 %v622_v60 }
 0x5c3   :  { %1062 = vrcp.f32 %v1164_v29 }
 0x5c8   :  { %v1061_v61 = vpop.eup %1060 }
 0x5c9   :  { %v626_v62 = vmul.f32 %v1061_v61, %v1057_v47  ;;  %v651_v63 = vpop.permute.xlu2 %650  ;;  %v1063_v30 = vpop.eup %1062 }
 0x5ca   :  { %v656_v0 = vsel %vm229_vm2, %v651_v63, 0  ;;  %v711_v31 = vmul.f32 32.0, %v1063_v30  ;;  %vm715_vm3 = vweird.f32 %v1063_v30  ;;  %v1024_v63 = vld [vmem:[%s1466_s10] ss:$0 sm:$0xff] }
 0x5cb   :  { %v628_v1 = vpack.c.bf16 %v626_v62, %v626_v62  ;;  %665 = vmatpush.bf16.msrb.mxu0 %v656_v0 }
 0x5cc   :  { %v712_v32 = vsub.f32 1.0, %v711_v31 }
 0x5ce   :  { %968 = vmatmul.msk.bf16.vlgmr.msrb.gmra.mxu0 %vm153_vm1, %v628_v1  ;;  %v713_v33 = vmul.f32 %v1063_v30, %v712_v32 }
 0x5d0   :  { %v714_v28 = vadd.f32 %v1063_v30, %v713_v33 }
 0x5dc   :  { %v646_v4 = vpop.f32.mrf.mxu3 }
 0x5e4   :  { %v648_v48 = vpop.f32.mrf.mxu3 }
 0x5e5   :  { %v1025_v48 = vld [vmem:[%s1467_s11] ss:$0 sm:$0xff] }
 0x5f9   :  { %v552_v6 = vpop.f32.mrf.mxu0 }
 0x5fa   :  { %v557_v7 = vadd.f32 %v552_v6, %v420_v5 }
 0x601   :  { %v554_v8 = vpop.f32.mrf.mxu0 }
 0x602   :  { %v558_v20 = vadd.f32 %v554_v8, %v422_v18 }
 0x64b   :  { %v667_v11 = vpop.f32.mrf.mxu0 }
 0x64c   :  { %v671_v12 = vpack.c.bf16 %v667_v11, %v646_v4  ;;  %v1003_v11 = vld [vmem:[%s1464_s8 + $0x18] sm:$0xff] }
 0x64d   :  { %850 = vmatpush.bf16.msrb.mxu3 %v1003_v11 }
 0x64e   :  { %969 = vmatmul.msk.bf16.vlgmr.msrb.gmra.mxu1 %vm153_vm1, %v671_v12  ;;  %v1002_v12 = vld [vmem:[%s1464_s8 + $0x10] sm:$0xff] }
 0x651   :  { %851 = vmatpush.bf16.msrb.mxu3 %v1002_v12 }
 0x653   :  { %v669_v13 = vpop.f32.mrf.mxu0 }
 0x654   :  { %v1001_v13 = vld [vmem:[%s1464_s8 + $0x8] sm:$0xff] }
 0x655   :  { %852 = vmatpush.bf16.msrb.mxu3 %v1001_v13 }
 0x6cb   :  { %v687_v15 = vpop.f32.mrf.mxu1 }
 0x6cc   :  { %v692_v16 = vadd.f32 %v687_v15, %v557_v7 }
 0x6ce   :  { %v698_v17 = vadd.f32 %v1023_v14, %v692_v16  ;;  %v1026_v16 = vld [vmem:[%s1463_s7] ss:$0 sm:$0xff] }
 0x6d0   :  { %v700_v19 = vadd.f32 %v698_v17, %v1260_v2  ;;  %v1404_v2 = vsel %vm715_vm3, %v1063_v30, %v714_v28 }
 0x6d2   :  { %v704_v22 = vsel %vm103_vm0, %v700_v19, 0.0 }
 0x6d3   :  { %705 = vadd.xlane.f32.xlu0 %v704_v22  ;;  %v689_v23 = vpop.f32.mrf.mxu1 }
 0x6d4   :  { %v693_v24 = vadd.f32 %v689_v23, %v558_v20 }
 0x6d6   :  { %v699_v25 = vadd.f32 %v1023_v14, %v693_v24  ;;  %v1000_v14 = vld [vmem:[%s1464_s8] sm:$0xff] }
 0x6d7   :  { %853 = vmatpush.bf16.msrb.mxu3 %v1000_v14  ;;  %v1027_v24 = vld [vmem:[%s1465_s9] ss:$0 sm:$0xff] }
 0x6d8   :  { %v701_v26 = vadd.f32 %v699_v25, %v1265_v3 }
 0x6da   :  { %v707_v27 = vsel %vm103_vm0, %v701_v26, 0.0 }
 0x6db   :  { %708 = vadd.xlane.f32.xlu2 %v707_v27 }
 0x746   :  { %v706_v34 = vpop.xlane.xlu0 %705 }
 0x747   :  { %v717_v35 = vmul.f32 %v1404_v2, %v706_v34 }
 0x749   :  { %v719_v36 = vsub.f32 %v700_v19, %v717_v35 }
 0x74b   :  { %v721_v37 = vmul.f32 %v719_v36, %v719_v36 }
 0x74d   :  { %v723_v3 = vsel %vm103_vm0, %v721_v37, 0.0 }
 0x74e   :  { %724 = vadd.xlane.f32.xlu1 %v723_v3  ;;  %v709_v38 = vpop.xlane.xlu2 %708 }
 0x74f   :  { %v718_v39 = vmul.f32 %v1404_v2, %v709_v38 }
 0x751   :  { %v720_v41 = vsub.f32 %v701_v26, %v718_v39 }
 0x753   :  { %v722_v42 = vmul.f32 %v720_v41, %v720_v41 }
 0x755   :  { %v726_v43 = vsel %vm103_vm0, %v722_v42, 0.0 }
 0x756   :  { %727 = vadd.xlane.f32.xlu1 %v726_v43 }
 0x7c1   :  { %v725_v46 = vpop.xlane.xlu1 %724 }
 0x7c2   :  { %v729_v40 = vmul.f32 %v725_v46, %v1404_v2 }
 0x7c4   :  { %v731_v47 = vadd.f32 1e-05, %v729_v40 }
 0x7c6   :  { %1064 = vrsqrt.f32 %v731_v47  ;;  %vm739_vm5 = vweird.f32 %v731_v47 }
 0x7c9   :  { %v728_v50 = vpop.xlane.xlu1 %727 }
 0x7ca   :  { %v730_v51 = vmul.f32 %v728_v50, %v1404_v2 }
 0x7cc   :  { %v1065_v44 = vpop.eup %1064  ;;  %v732_v52 = vadd.f32 1e-05, %v730_v51 }
 0x7cd   :  { %v734_v53 = vmul.f32 %v1065_v44, %v731_v47  ;;  %vm740_vm4 = vweird.f32 %v1065_v44 }
 0x7ce   :  { %1066 = vrsqrt.f32 %v732_v52  ;;  %vm741_vm6 = vmor %vm739_vm5, %vm740_vm4  ;;  %vm749_vm8 = vweird.f32 %v732_v52 }
 0x7cf   :  { %v735_v54 = vmul.f32 %v1065_v44, %v734_v53 }
 0x7d1   :  { %v736_v55 = vmul.f32 0.5, %v735_v54 }
 0x7d3   :  { %v737_v56 = vsub.f32 1.5, %v736_v55 }
 0x7d4   :  { %v1067_v57 = vpop.eup %1066 }
 0x7d5   :  { %v738_v58 = vmul.f32 %v1065_v44, %v737_v56  ;;  %v744_v59 = vmul.f32 %v1067_v57, %v732_v52  ;;  %vm750_vm7 = vweird.f32 %v1067_v57 }
 0x7d6   :  { %vm751_vm9 = vmor %vm749_vm8, %vm750_vm7 }
 0x7d7   :  { %v745_v21 = vmul.f32 %v1067_v57, %v744_v59  ;;  %v742_v60 = vsel %vm741_vm6, %v1065_v44, %v738_v58 }
 0x7d8   :  { %v753_v0 = vmul.f32 %v742_v60, %v719_v36 }
 0x7d9   :  { %v746_v61 = vmul.f32 0.5, %v745_v21 }
 0x7da   :  { %v758_v5 = vmul.f32 %v1024_v63, %v753_v0 }
 0x7db   :  { %v747_v62 = vsub.f32 1.5, %v746_v61 }
 0x7dc   :  { %v763_v9 = vadd.f32 %v1025_v48, %v758_v5 }
 0x7dd   :  { %v748_v1 = vmul.f32 %v1067_v57, %v747_v62 }
 0x7df   :  { %v752_v4 = vsel %vm751_vm9, %v1067_v57, %v748_v1  ;;  %v1028_v57 = vld [vmem:[%s1468_s12] ss:$0 sm:$0xff]  ;;  %s1165_s12 = smov [#allocation7]  }
 0x7e0   :  { %v754_v6 = vmul.f32 %v752_v4, %v720_v41  ;;  %s924_s25 = sshll.u32 %s1165_s12, 4  ;;  %s925_s25 = int_to_ptr.vmem [resolvable:$true] %s924_s25 }
 0x7e2   :  { %v759_v7 = vmul.f32 %v1024_v63, %v754_v6 }
 0x7e4   :  { %v764_v10 = vadd.f32 %v1025_v48, %v759_v7 }
 0x7e6   :  { %v765_v8 = vpack.c.bf16 %v764_v10, %v763_v9 }
 0x7e8   :  { %978 = vmatmul.msk.bf16.vlgmr.msrb.gmra.mxu2 %vm103_vm0, %v765_v8 }
 0x86b   :  { %v798_v15 = vpop.f32.mrf.mxu2 }
 0x86c   :  { %v799_v17 = vadd.f32 %v1026_v16, %v798_v15 }
 0x86e   :  { %v803_v20 = vmax.f32 %v799_v17, 0.0 }
 0x873   :  { %v800_v18 = vpop.f32.mrf.mxu2 }
 0x874   :  { %v801_v19 = vadd.f32 %v1026_v16, %v800_v18 }
 0x876   :  { %v804_v22 = vmax.f32 %v801_v19, 0.0 }
 0x878   :  { %v805_v23 = vpack.c.bf16 %v804_v22, %v803_v20 }
 0x87a   :  { %995 = vmatmul.msk.bf16.vlgmr.msrb.gmra.mxu3 %vm842_vm10, %v805_v23 }
 0x8fd   :  { %v855_v25 = vpop.f32.mrf.mxu3 }
 0x8fe   :  { %v856_v26 = vadd.f32 %v1027_v24, %v855_v25 }
 0x900   :  { %v860_v27 = vadd.f32 %v856_v26, %v763_v9 }
 0x902   :  { %v864_v29 = vsel %vm103_vm0, %v860_v27, 0.0 }
 0x903   :  { %865 = vadd.xlane.f32.xlu1 %v864_v29 }
 0x905   :  { %v857_v30 = vpop.f32.mrf.mxu3 }
 0x906   :  { %v858_v31 = vadd.f32 %v1027_v24, %v857_v30 }
 0x908   :  { %v861_v32 = vadd.f32 %v858_v31, %v764_v10 }
 0x90a   :  { %v867_v33 = vsel %vm103_vm0, %v861_v32, 0.0 }
 0x90b   :  { %868 = vadd.xlane.f32.xlu1 %v867_v33 }
 0x976   :  { %v866_v28 = vpop.xlane.xlu1 %865 }
 0x977   :  { %v870_v34 = vmul.f32 %v866_v28, %v1404_v2 }
 0x979   :  { %v872_v35 = vsub.f32 %v860_v27, %v870_v34 }
 0x97b   :  { %v874_v36 = vmul.f32 %v872_v35, %v872_v35 }
 0x97d   :  { %v876_v37 = vsel %vm103_vm0, %v874_v36, 0.0 }
 0x97e   :  { %877 = vadd.xlane.f32.xlu0 %v876_v37  ;;  %v869_v3 = vpop.xlane.xlu1 %868 }
 0x97f   :  { %v871_v38 = vmul.f32 %v869_v3, %v1404_v2 }
 0x981   :  { %v873_v39 = vsub.f32 %v861_v32, %v871_v38 }
 0x983   :  { %v875_v41 = vmul.f32 %v873_v39, %v873_v39 }
 0x985   :  { %v879_v42 = vsel %vm103_vm0, %v875_v41, 0.0 }
 0x986   :  { %880 = vadd.xlane.f32.xlu1 %v879_v42 }
 0x9f1   :  { %v878_v43 = vpop.xlane.xlu0 %877 }
 0x9f2   :  { %v882_v45 = vmul.f32 %v878_v43, %v1404_v2 }
 0x9f4   :  { %v884_v46 = vadd.f32 1e-05, %v882_v45 }
 0x9f6   :  { %1068 = vrsqrt.f32 %v884_v46  ;;  %vm892_vm12 = vweird.f32 %v884_v46 }
 0x9f9   :  { %v881_v40 = vpop.xlane.xlu1 %880 }
 0x9fa   :  { %v883_v47 = vmul.f32 %v881_v40, %v1404_v2  ;;  %v1029_v2 = vld [vmem:[%s1469_s13] ss:$0 sm:$0xff]  ;;  %s1166_s13 = smov 128  }
 0x9fc   :  { %v1069_v49 = vpop.eup %1068  ;;  %v885_v50 = vadd.f32 1e-05, %v883_v47 }
 0x9fd   :  { %v887_v51 = vmul.f32 %v1069_v49, %v884_v46  ;;  %vm893_vm11 = vweird.f32 %v1069_v49 }
 0x9fe   :  { %1070 = vrsqrt.f32 %v885_v50  ;;  %vm894_vm13 = vmor %vm892_vm12, %vm893_vm11  ;;  %vm902_vm15 = vweird.f32 %v885_v50 }
 0x9ff   :  { %v888_v44 = vmul.f32 %v1069_v49, %v887_v51 }
 0xa01   :  { %v889_v52 = vmul.f32 0.5, %v888_v44 }
 0xa03   :  { %v890_v53 = vsub.f32 1.5, %v889_v52 }
 0xa04   :  { %v1071_v54 = vpop.eup %1070 }
 0xa05   :  { %v891_v55 = vmul.f32 %v1069_v49, %v890_v53  ;;  %v897_v56 = vmul.f32 %v1071_v54, %v885_v50  ;;  %vm903_vm14 = vweird.f32 %v1071_v54 }
 0xa06   :  { %vm904_vm1 = vmor %vm902_vm15, %vm903_vm14 }
 0xa07   :  { %v895_v58 = vsel %vm894_vm13, %v1069_v49, %v891_v55  ;;  %v898_v59 = vmul.f32 %v1071_v54, %v897_v56 }
 0xa08   :  { %v906_v21 = vmul.f32 %v895_v58, %v872_v35 }
 0xa09   :  { %v899_v60 = vmul.f32 0.5, %v898_v59 }
 0xa0a   :  { %v911_v61 = vmul.f32 %v1028_v57, %v906_v21 }
 0xa0b   :  { %v900_v62 = vsub.f32 1.5, %v899_v60 }
 0xa0c   :  { %v916_v63 = vadd.f32 %v1029_v2, %v911_v61 }
 0xa0d   :  { %v901_v0 = vmul.f32 %v1071_v54, %v900_v62 }
 0xa0e   :  { %918 = vst.msk [vmem:[#allocation7] sm:$0xff] %vm103_vm0, %v916_v63 }
 0xa0f   :  { %v905_v1 = vsel %vm904_vm1, %v1071_v54, %v901_v0 }
 0xa10   :  { %v907_v4 = vmul.f32 %v905_v1, %v873_v39 }
 0xa12   :  { %v912_v48 = vmul.f32 %v1028_v57, %v907_v4 }
 0xa14   :  { %v917_v5 = vadd.f32 %v1029_v2, %v912_v48 }
 0xa16   :  { %919 = vst.msk [vmem:[#allocation7 + $0x8] sm:$0xff] %vm103_vm0, %v917_v5 }
 0xa17   :  { %932 = dma.vmem_to_hbm [thread:$0]  %s925_s25, 256, %s927_s27, [#allocation4], %s1166_s13, %s1166_s13, %s1167_s28  }
 0xa18   :  { %1148 = dma.done.wait [#allocation4], 256  }
 0xa19   :  { %1149 = vsyncadd [#allocation4], 4294967040 }
 0xa1a   :  { %937 = vsyncpa [#allocation3], 1 }
 0xa1b   :  { %938 = vsyncpa [#allocation6], 1 }
 0xa1c   :  { %939 = vsyncpa [#allocation4], 1 }

</bundles_post_ra>
